<compile_context>
chip_gen: v6e
topology: v6e:2x2x1
jax: 0.10.0
libtpu: 0.0.40
codegen_flags: <defaults>
</compile_context>

<pallas_src>
from functools import partial

import numpy as np
import jax
import jax.numpy as jnp
from jax.experimental import pallas as pl
from jax.experimental.pallas import tpu as pltpu

EPS = 1e-6        # Norm eps (added to std, matching torch)
NEG_INF = -1e9    # masked_fill value


def _round_up(n, m):
    return ((n + m - 1) // m) * m


# ---------------------------------------------------------------------------
# Fused per-batch kernel:
#   h1  = norm_1(x)
#   x1  = x + MHA(h1, mask)            (attn dropout / dropout_1 = identity)
#   h2  = norm_2(x1)
#   out = x1 + ReLU(h2 @ W1 + b1) @ W2 + b2   (dropout_2 = identity)
# ---------------------------------------------------------------------------
def _make_encoder_kernel(S, D, DP, H, DKP, DFF):
    HD = H * DKP
    bf16 = jnp.bfloat16

    def layer_norm(v, alpha, beta, valid):
        # v: (S, DP) f32; statistics over the first D (real) columns only.
        mean = jnp.sum(v, axis=-1, keepdims=True) * (1.0 / D)
        c = jnp.where(valid, v - mean, 0.0)
        # torch.std default = unbiased (ddof=1); eps added to std (matches Norm)
        var = jnp.sum(c * c, axis=-1, keepdims=True) * (1.0 / (D - 1))
        inv = pl.reciprocal(jnp.sqrt(var) + EPS, approx=True)
        return alpha * (c * inv) + beta      # alpha/beta pad = 0 -> pad cols = 0

    def kernel(x_ref, mask_ref, n1a_ref, n1b_ref, wqkv_ref, bqkv_ref,
               wo_ref, bo_ref, n2a_ref, n2b_ref, w1_ref, b1_ref, w2_ref,
               b2_ref, o_ref):
        x = x_ref[0]                       # (S, DP)  f32, pad cols are 0
        mask_row = mask_ref[0]             # (1, S)   int32
        valid = jax.lax.broadcasted_iota(jnp.int32, (1, DP), 1) < D

        # ---- attention sub-layer ----
        h1 = layer_norm(x, n1a_ref[...], n1b_ref[...], valid)
        hb = h1.astype(bf16)
        # fused QKV projection; 1/sqrt(DK) already folded into Wq/bq host-side
        qkv = jnp.dot(hb, wqkv_ref[...],
                      preferred_element_type=jnp.float32) + bqkv_ref[...]

        acc = x + bo_ref[...]              # residual + output-projection bias
        for h in range(H):                 # H is small -> static unroll
            qh = qkv[:, h * DKP:(h + 1) * DKP].astype(bf16)
            kh = qkv[:, HD + h * DKP: HD + (h + 1) * DKP].astype(bf16)
            vh = qkv[:, 2 * HD + h * DKP: 2 * HD + (h + 1) * DKP].astype(bf16)
            # scores = qh @ kh.T (NT matmul, no transpose materialised)
            s = jax.lax.dot_general(qh, kh, (((1,), (1,)), ((), ())),
                                    preferred_element_type=jnp.float32)
            s = jnp.where(mask_row == 0, NEG_INF, s)   # exact masked_fill
            s = s - jnp.max(s, axis=-1, keepdims=True)
            e = jnp.exp(s)
            p = e * pl.reciprocal(jnp.sum(e, axis=-1, keepdims=True),
                                  approx=True)          # softmax
            oh = jnp.dot(p.astype(bf16), vh,
                         preferred_element_type=jnp.float32)       # (S, DKP)
            # per-head output projection accumulated into the residual
            acc = acc + jnp.dot(oh.astype(bf16), wo_ref[h],
                                preferred_element_type=jnp.float32)

        x1 = acc

        # ---- feed-forward sub-layer (W1/W2 resident in VMEM) ----
        h2 = layer_norm(x1, n2a_ref[...], n2b_ref[...], valid)
        f = jnp.dot(h2.astype(bf16), w1_ref[...],
                    preferred_element_type=jnp.float32) + b1_ref[...]
        f = jnp.maximum(f, 0.0)
        out = x1 + jnp.dot(f.astype(bf16), w2_ref[...],
                           preferred_element_type=jnp.float32) + b2_ref[...]

        o_ref[0] = out

    return kernel


@partial(jax.jit, static_argnames=("heads",))
def encoder_layer(x, mask, params, heads):
    """x: (B, S, D) f32, mask: (B, 1, S) int32 -> (B, S, D) f32."""
    B, S, D = x.shape
    H = heads
    assert D % H == 0
    DK = D // H
    DFF = params["w1"].shape[1]
    bf16 = jnp.bfloat16

    DP = _round_up(D, 128)     # lane-dense model dim
    DKP = _round_up(DK, 128)   # lane-aligned per-head dim (head slices = 128-chunks)
    HD = H * DKP
    scale = 1.0 / float(np.sqrt(DK))

    # ---------------- host-side (free) weight prep ----------------
    def split_pad_heads(w, b, s_=1.0):
        # w: (D, D), columns grouped by head (DK each); b: (1, D)
        w = (w * s_).reshape(D, H, DK)
        b = (b * s_).reshape(1, H, DK)
        w = jnp.pad(w, ((0, DP - D), (0, 0), (0, DKP - DK)))      # (DP, H, DKP)
        b = jnp.pad(b, ((0, 0), (0, 0), (0, DKP - DK)))           # (1, H, DKP)
        return w.reshape(DP, HD), b.reshape(1, HD)

    wq_p, bq_p = split_pad_heads(params["wq"], params["bq"], scale)  # scale folded
    wk_p, bk_p = split_pad_heads(params["wk"], params["bk"])
    wv_p, bv_p = split_pad_heads(params["wv"], params["bv"])
    wqkv = jnp.concatenate([wq_p, wk_p, wv_p], axis=1).astype(bf16)  # (DP, 3*HD)
    bqkv = jnp.concatenate([bq_p, bk_p, bv_p], axis=1)               # (1, 3*HD) f32

    wo = params["wo"].reshape(H, DK, D)
    wo = jnp.pad(wo, ((0, 0), (0, DKP - DK), (0, DP - D))).astype(bf16)  # (H,DKP,DP)
    bo = jnp.pad(params["bo"], ((0, 0), (0, DP - D)))                    # (1, DP)

    def pad_d(a):                       # (1, D) -> (1, DP), zeros in padding
        return jnp.pad(a, ((0, 0), (0, DP - D)))

    n1a, n1b = pad_d(params["n1a"]), pad_d(params["n1b"])
    n2a, n2b = pad_d(params["n2a"]), pad_d(params["n2b"])

    w1 = jnp.pad(params["w1"], ((0, DP - D), (0, 0))).astype(bf16)   # (DP, DFF)
    b1 = params["b1"]                                                # (1, DFF)
    w2 = jnp.pad(params["w2"], ((0, 0), (0, DP - D))).astype(bf16)   # (DFF, DP)
    b2 = pad_d(params["b2"])                                         # (1, DP)

    x_pad = jnp.pad(x, ((0, 0), (0, 0), (0, DP - D)))                # (B, S, DP)

    weights = [n1a, n1b, wqkv, bqkv, wo, bo, n2a, n2b, w1, b1, w2, b2]

    def full_spec(a):
        nd = a.ndim
        return pl.BlockSpec(a.shape, lambda b, _nd=nd: (0,) * _nd)

    flops = int(B * (2 * S * DP * 3 * HD            # fused QKV
                     + H * 4 * S * S * DKP          # scores + P@V
                     + H * 2 * S * DKP * DP         # output projection
                     + 4 * S * DP * DFF))           # feed-forward
    bytes_accessed = int(4 * B * S * DP * 2 + 4 * B * S
                         + 2 * (DP * 3 * HD + H * DKP * DP + 2 * DP * DFF)
                         + 4 * (3 * HD + 6 * DP + DFF))

    out_pad = pl.pallas_call(
        _make_encoder_kernel(S, D, DP, H, DKP, DFF),
        grid=(B,),
        in_specs=[pl.BlockSpec((1, S, DP), lambda b: (b, 0, 0)),   # x (padded)
                  pl.BlockSpec((1, 1, S), lambda b: (b, 0, 0))]    # mask
                 + [full_spec(w) for w in weights],
        out_specs=pl.BlockSpec((1, S, DP), lambda b: (b, 0, 0)),
        out_shape=jax.ShapeDtypeStruct((B, S, DP), jnp.float32),
        compiler_params=pltpu.CompilerParams(
            dimension_semantics=("parallel",),
            vmem_limit_bytes=32 * 1024 * 1024),
        cost_estimate=pl.CostEstimate(
            flops=flops, transcendentals=int(B * H * S * S),
            bytes_accessed=bytes_accessed),
    )(x_pad, mask, *weights)

    return out_pad[..., :D]


# ---------------------------------------------------------------------------
# Pure-JAX reference (replicates the PyTorch forward in eval mode, f32)
# ---------------------------------------------------------------------------
def reference(x, mask, p, heads):
    B, S, D = x.shape
    dk = D // heads

    def norm(v, a, b):
        mean = jnp.mean(v, -1, keepdims=True)
        c = v - mean
        std = jnp.sqrt(jnp.sum(c * c, -1, keepdims=True) / (D - 1))
        return a * c / (std + EPS) + b

    h = norm(x, p["n1a"][0], p["n1b"][0])
    q = h @ p["wq"] + p["bq"][0]
    k = h @ p["wk"] + p["bk"][0]
    v = h @ p["wv"] + p["bv"][0]
    q = q.reshape(B, S, heads, dk).transpose(0, 2, 1, 3)
    k = k.reshape(B, S, heads, dk).transpose(0, 2, 1, 3)
    v = v.reshape(B, S, heads, dk).transpose(0, 2, 1, 3)
    scores = (q @ k.transpose(0, 1, 3, 2)) / np.sqrt(dk)
    m = mask[:, None, :, :]                     # (B, 1, 1, S)
    scores = jnp.where(m == 0, NEG_INF, scores)
    attn = jax.nn.softmax(scores, axis=-1) @ v  # (B, H, S, dk)
    concat = attn.transpose(0, 2, 1, 3).reshape(B, S, D)
    x1 = x + (concat @ p["wo"] + p["bo"][0])
    h2 = norm(x1, p["n2a"][0], p["n2b"][0])
    f = jnp.maximum(h2 @ p["w1"] + p["b1"][0], 0.0) @ p["w2"] + p["b2"][0]
    return x1 + f


def init_params(key, d_model, heads, d_ff):
    keys = jax.random.split(key, 8)
    s = 0.02

    def lin(k, din, dout):
        return (jax.random.normal(k, (din, dout), jnp.float32) * s,
                jnp.zeros((1, dout), jnp.float32))

    wq, bq = lin(keys[0], d_model, d_model)
    wk, bk = lin(keys[1], d_model, d_model)
    wv, bv = lin(keys[2], d_model, d_model)
    wo, bo = lin(keys[3], d_model, d_model)
    w1, b1 = lin(keys[4], d_model, d_ff)
    w2, b2 = lin(keys[5], d_ff, d_model)
    return dict(
        n1a=jnp.ones((1, d_model), jnp.float32),
        n1b=jnp.zeros((1, d_model), jnp.float32),
        n2a=jnp.ones((1, d_model), jnp.float32),
        n2b=jnp.zeros((1, d_model), jnp.float32),
        wq=wq, bq=bq, wk=wk, bk=bk, wv=wv, bv=bv, wo=wo, bo=bo,
        w1=w1, b1=b1, w2=w2, b2=b2,
    )


if __name__ == "__main__":
    B, S, D, H = 2, 8, 32, 4
    DFF = 2048   # FeedForward default d_ff in the PyTorch module

    key = jax.random.PRNGKey(0)
    kx, kp = jax.random.split(key)
    x = jax.random.normal(kx, (B, S, D), jnp.float32)

    # mask: (B, 1, S); second example has the last 3 key positions masked out
    mask_np = np.ones((B, 1, S), np.int32)
    mask_np[1, 0, S - 3:] = 0
    mask = jnp.asarray(mask_np)

    params = init_params(kp, D, H, DFF)

    out = jax.block_until_ready(encoder_layer(x, mask, params, H))
    ref = jax.block_until_ready(reference(x, mask, params, H))

    np.testing.assert_allclose(np.asarray(out), np.asarray(ref),
                               rtol=2e-2, atol=2e-2)
    print("KERNEL_OK")
</pallas_src>

<mosaic_0001>
module attributes {stable_mosaic.version = 11 : i64} {
  func.func @kernel(%arg0: i32, %arg1: memref<1x8x128xf32, #tpu.memory_space<vmem>>, %arg2: memref<1x1x8xi32, #tpu.memory_space<vmem>>, %arg3: memref<1x128xf32, #tpu.memory_space<vmem>>, %arg4: memref<1x128xf32, #tpu.memory_space<vmem>>, %arg5: memref<128x1536xbf16, #tpu.memory_space<vmem>>, %arg6: memref<1x1536xf32, #tpu.memory_space<vmem>>, %arg7: memref<4x128x128xbf16, #tpu.memory_space<vmem>>, %arg8: memref<1x128xf32, #tpu.memory_space<vmem>>, %arg9: memref<1x128xf32, #tpu.memory_space<vmem>>, %arg10: memref<1x128xf32, #tpu.memory_space<vmem>>, %arg11: memref<128x2048xbf16, #tpu.memory_space<vmem>>, %arg12: memref<1x2048xf32, #tpu.memory_space<vmem>>, %arg13: memref<2048x128xbf16, #tpu.memory_space<vmem>>, %arg14: memref<1x128xf32, #tpu.memory_space<vmem>>, %arg15: memref<1x8x128xf32, #tpu.memory_space<vmem>>) attributes {dimension_semantics = [#tpu.dimension_semantics<parallel>], iteration_bounds = array<i64: 2>, scalar_prefetch = 0 : i64, scratch_operands = 0 : i64, tpu.core_type = #tpu.core_type<tc>, window_params = [{transform_indices = @transform_0, window_bounds = array<i64: 1, 8, 128>}, {transform_indices = @transform_1, window_bounds = array<i64: 1, 1, 8>}, {pipeline_mode = #tpu.pipeline_mode<synchronous>, transform_indices = @transform_2, window_bounds = array<i64: 1, 128>}, {pipeline_mode = #tpu.pipeline_mode<synchronous>, transform_indices = @transform_3, window_bounds = array<i64: 1, 128>}, {pipeline_mode = #tpu.pipeline_mode<synchronous>, transform_indices = @transform_4, window_bounds = array<i64: 128, 1536>}, {pipeline_mode = #tpu.pipeline_mode<synchronous>, transform_indices = @transform_5, window_bounds = array<i64: 1, 1536>}, {pipeline_mode = #tpu.pipeline_mode<synchronous>, transform_indices = @transform_6, window_bounds = array<i64: 4, 128, 128>}, {pipeline_mode = #tpu.pipeline_mode<synchronous>, transform_indices = @transform_7, window_bounds = array<i64: 1, 128>}, {pipeline_mode = #tpu.pipeline_mode<synchronous>, transform_indices = @transform_8, window_bounds = array<i64: 1, 128>}, {pipeline_mode = #tpu.pipeline_mode<synchronous>, transform_indices = @transform_9, window_bounds = array<i64: 1, 128>}, {pipeline_mode = #tpu.pipeline_mode<synchronous>, transform_indices = @transform_10, window_bounds = array<i64: 128, 2048>}, {pipeline_mode = #tpu.pipeline_mode<synchronous>, transform_indices = @transform_11, window_bounds = array<i64: 1, 2048>}, {pipeline_mode = #tpu.pipeline_mode<synchronous>, transform_indices = @transform_12, window_bounds = array<i64: 2048, 128>}, {pipeline_mode = #tpu.pipeline_mode<synchronous>, transform_indices = @transform_13, window_bounds = array<i64: 1, 128>}, {transform_indices = @transform_14, window_bounds = array<i64: 1, 8, 128>}]} {
    %c0 = arith.constant 0 : index
    %c0_0 = arith.constant 0 : index
    %c0_1 = arith.constant 0 : index
    %0 = vector.load %arg1[%c0, %c0_0, %c0_1] : memref<1x8x128xf32, #tpu.memory_space<vmem>>, vector<1x8x128xf32>
    %1 = vector.shape_cast %0 : vector<1x8x128xf32> to vector<8x128xf32>
    %c0_2 = arith.constant 0 : index
    %c0_3 = arith.constant 0 : index
    %c0_4 = arith.constant 0 : index
    %2 = vector.load %arg2[%c0_2, %c0_3, %c0_4] : memref<1x1x8xi32, #tpu.memory_space<vmem>>, vector<1x1x8xi32>
    %3 = vector.shape_cast %2 : vector<1x1x8xi32> to vector<1x8xi32>
    %4 = tpu.iota {dimensions = array<i32: 1>} : vector<1x128xi32>
    %c32_i32 = arith.constant 32 : i32
    %5 = vector.broadcast %c32_i32 : i32 to vector<1x128xi32>
    %6 = arith.cmpi slt, %4, %5 : vector<1x128xi32>
    %c0_5 = arith.constant 0 : index
    %c0_6 = arith.constant 0 : index
    %7 = vector.load %arg3[%c0_5, %c0_6] : memref<1x128xf32, #tpu.memory_space<vmem>>, vector<1x128xf32>
    %c0_7 = arith.constant 0 : index
    %c0_8 = arith.constant 0 : index
    %8 = vector.load %arg4[%c0_7, %c0_8] : memref<1x128xf32, #tpu.memory_space<vmem>>, vector<1x128xf32>
    %cst = arith.constant dense<0.000000e+00> : vector<8xf32>
    %9 = vector.multi_reduction <add>, %1, %cst [1] : vector<8x128xf32> to vector<8xf32>
    %10 = vector.shape_cast %9 : vector<8xf32> to vector<8x1xf32>
    %cst_9 = arith.constant 3.125000e-02 : f32
    %11 = vector.broadcast %cst_9 : f32 to vector<8x1xf32>
    %12 = arith.mulf %10, %11 : vector<8x1xf32>
    %13 = vector.broadcast %12 : vector<8x1xf32> to vector<8x128xf32>
    %14 = arith.subf %1, %13 : vector<8x128xf32>
    %cst_10 = arith.constant 0.000000e+00 : f32
    %15 = vector.shape_cast %6 : vector<1x128xi1> to vector<1x128xi1>
    %16 = vector.broadcast %15 : vector<1x128xi1> to vector<8x128xi1>
    %17 = vector.broadcast %cst_10 : f32 to vector<8x128xf32>
    %18 = arith.select %16, %14, %17 : vector<8x128xi1>, vector<8x128xf32>
    %19 = arith.mulf %18, %18 : vector<8x128xf32>
    %cst_11 = arith.constant dense<0.000000e+00> : vector<8xf32>
    %20 = vector.multi_reduction <add>, %19, %cst_11 [1] : vector<8x128xf32> to vector<8xf32>
    %21 = vector.shape_cast %20 : vector<8xf32> to vector<8x1xf32>
    %cst_12 = arith.constant 0.0322580636 : f32
    %22 = vector.broadcast %cst_12 : f32 to vector<8x1xf32>
    %23 = arith.mulf %21, %22 : vector<8x1xf32>
    %24 = math.sqrt %23 : vector<8x1xf32>
    %cst_13 = arith.constant 9.99999997E-7 : f32
    %25 = vector.broadcast %cst_13 : f32 to vector<8x1xf32>
    %26 = arith.addf %24, %25 : vector<8x1xf32>
    %27 = tpu.reciprocal %26 {approx = true} : vector<8x1xf32> -> vector<8x1xf32>
    %28 = vector.broadcast %27 : vector<8x1xf32> to vector<8x128xf32>
    %29 = arith.mulf %18, %28 : vector<8x128xf32>
    %30 = vector.broadcast %7 : vector<1x128xf32> to vector<8x128xf32>
    %31 = arith.mulf %30, %29 : vector<8x128xf32>
    %32 = vector.broadcast %8 : vector<1x128xf32> to vector<8x128xf32>
    %33 = arith.addf %31, %32 : vector<8x128xf32>
    %34 = arith.truncf %33 : vector<8x128xf32> to vector<8x128xbf16>
    %c0_14 = arith.constant 0 : index
    %c0_15 = arith.constant 0 : index
    %35 = vector.load %arg5[%c0_14, %c0_15] : memref<128x1536xbf16, #tpu.memory_space<vmem>>, vector<128x1536xbf16>
    %cst_16 = arith.constant dense<0.000000e+00> : vector<8x1536xf32>
    %36 = tpu.matmul %34, %35, %cst_16 {dimension_numbers = #tpu.dot_dimension_numbers<[1], [0], [0], [1], [0, 0, 1, 1], [], []>} : vector<8x128xbf16>, vector<128x1536xbf16>, vector<8x1536xf32> -> vector<8x1536xf32>
    %c0_17 = arith.constant 0 : index
    %c0_18 = arith.constant 0 : index
    %37 = vector.load %arg6[%c0_17, %c0_18] : memref<1x1536xf32, #tpu.memory_space<vmem>>, vector<1x1536xf32>
    %38 = vector.broadcast %37 : vector<1x1536xf32> to vector<8x1536xf32>
    %39 = arith.addf %36, %38 : vector<8x1536xf32>
    %c0_19 = arith.constant 0 : index
    %c0_20 = arith.constant 0 : index
    %40 = vector.load %arg8[%c0_19, %c0_20] : memref<1x128xf32, #tpu.memory_space<vmem>>, vector<1x128xf32>
    %41 = vector.broadcast %40 : vector<1x128xf32> to vector<8x128xf32>
    %42 = arith.addf %1, %41 : vector<8x128xf32>
    %43 = vector.extract_strided_slice %39 {offsets = [0, 0], sizes = [8, 128], strides = [1, 1]} : vector<8x1536xf32> to vector<8x128xf32>
    %44 = arith.truncf %43 : vector<8x128xf32> to vector<8x128xbf16>
    %45 = vector.extract_strided_slice %39 {offsets = [0, 512], sizes = [8, 128], strides = [1, 1]} : vector<8x1536xf32> to vector<8x128xf32>
    %46 = arith.truncf %45 : vector<8x128xf32> to vector<8x128xbf16>
    %47 = vector.extract_strided_slice %39 {offsets = [0, 1024], sizes = [8, 128], strides = [1, 1]} : vector<8x1536xf32> to vector<8x128xf32>
    %48 = arith.truncf %47 : vector<8x128xf32> to vector<8x128xbf16>
    %cst_21 = arith.constant dense<0.000000e+00> : vector<8x8xf32>
    %49 = tpu.matmul %44, %46, %cst_21 {dimension_numbers = #tpu.dot_dimension_numbers<[1], [1], [0], [0], [0, 0, 1, 0], [], []>} : vector<8x128xbf16>, vector<8x128xbf16>, vector<8x8xf32> -> vector<8x8xf32>
    %c0_i32 = arith.constant 0 : i32
    %50 = vector.broadcast %c0_i32 : i32 to vector<1x8xi32>
    %51 = arith.cmpi eq, %3, %50 : vector<1x8xi32>
    %cst_22 = arith.constant -1.000000e+09 : f32
    %52 = vector.shape_cast %51 : vector<1x8xi1> to vector<1x8xi1>
    %53 = vector.broadcast %52 : vector<1x8xi1> to vector<8x8xi1>
    %54 = vector.broadcast %cst_22 : f32 to vector<8x8xf32>
    %55 = arith.select %53, %54, %49 : vector<8x8xi1>, vector<8x8xf32>
    %cst_23 = arith.constant dense<0xFF800000> : vector<8xf32>
    %56 = vector.multi_reduction <maximumf>, %55, %cst_23 [1] : vector<8x8xf32> to vector<8xf32>
    %57 = vector.shape_cast %56 : vector<8xf32> to vector<8x1xf32>
    %58 = vector.broadcast %57 : vector<8x1xf32> to vector<8x8xf32>
    %59 = arith.subf %55, %58 : vector<8x8xf32>
    %60 = math.exp %59 : vector<8x8xf32>
    %cst_24 = arith.constant dense<0.000000e+00> : vector<8xf32>
    %61 = vector.multi_reduction <add>, %60, %cst_24 [1] : vector<8x8xf32> to vector<8xf32>
    %62 = vector.shape_cast %61 : vector<8xf32> to vector<8x1xf32>
    %63 = tpu.reciprocal %62 {approx = true} : vector<8x1xf32> -> vector<8x1xf32>
    %64 = vector.broadcast %63 : vector<8x1xf32> to vector<8x8xf32>
    %65 = arith.mulf %60, %64 : vector<8x8xf32>
    %66 = arith.truncf %65 : vector<8x8xf32> to vector<8x8xbf16>
    %cst_25 = arith.constant dense<0.000000e+00> : vector<8x128xf32>
    %67 = tpu.matmul %66, %48, %cst_25 {dimension_numbers = #tpu.dot_dimension_numbers<[1], [0], [0], [1], [0, 0, 1, 1], [], []>} : vector<8x8xbf16>, vector<8x128xbf16>, vector<8x128xf32> -> vector<8x128xf32>
    %68 = arith.truncf %67 : vector<8x128xf32> to vector<8x128xbf16>
    %c0_26 = arith.constant 0 : index
    %c0_27 = arith.constant 0 : index
    %c0_28 = arith.constant 0 : index
    %69 = vector.load %arg7[%c0_26, %c0_27, %c0_28] : memref<4x128x128xbf16, #tpu.memory_space<vmem>>, vector<1x128x128xbf16>
    %70 = vector.shape_cast %69 : vector<1x128x128xbf16> to vector<128x128xbf16>
    %cst_29 = arith.constant dense<0.000000e+00> : vector<8x128xf32>
    %71 = tpu.matmul %68, %70, %cst_29 {dimension_numbers = #tpu.dot_dimension_numbers<[1], [0], [0], [1], [0, 0, 1, 1], [], []>} : vector<8x128xbf16>, vector<128x128xbf16>, vector<8x128xf32> -> vector<8x128xf32>
    %72 = arith.addf %42, %71 : vector<8x128xf32>
    %73 = vector.extract_strided_slice %39 {offsets = [0, 128], sizes = [8, 128], strides = [1, 1]} : vector<8x1536xf32> to vector<8x128xf32>
    %74 = arith.truncf %73 : vector<8x128xf32> to vector<8x128xbf16>
    %75 = vector.extract_strided_slice %39 {offsets = [0, 640], sizes = [8, 128], strides = [1, 1]} : vector<8x1536xf32> to vector<8x128xf32>
    %76 = arith.truncf %75 : vector<8x128xf32> to vector<8x128xbf16>
    %77 = vector.extract_strided_slice %39 {offsets = [0, 1152], sizes = [8, 128], strides = [1, 1]} : vector<8x1536xf32> to vector<8x128xf32>
    %78 = arith.truncf %77 : vector<8x128xf32> to vector<8x128xbf16>
    %cst_30 = arith.constant dense<0.000000e+00> : vector<8x8xf32>
    %79 = tpu.matmul %74, %76, %cst_30 {dimension_numbers = #tpu.dot_dimension_numbers<[1], [1], [0], [0], [0, 0, 1, 0], [], []>} : vector<8x128xbf16>, vector<8x128xbf16>, vector<8x8xf32> -> vector<8x8xf32>
    %c0_i32_31 = arith.constant 0 : i32
    %80 = vector.broadcast %c0_i32_31 : i32 to vector<1x8xi32>
    %81 = arith.cmpi eq, %3, %80 : vector<1x8xi32>
    %cst_32 = arith.constant -1.000000e+09 : f32
    %82 = vector.shape_cast %81 : vector<1x8xi1> to vector<1x8xi1>
    %83 = vector.broadcast %82 : vector<1x8xi1> to vector<8x8xi1>
    %84 = vector.broadcast %cst_32 : f32 to vector<8x8xf32>
    %85 = arith.select %83, %84, %79 : vector<8x8xi1>, vector<8x8xf32>
    %cst_33 = arith.constant dense<0xFF800000> : vector<8xf32>
    %86 = vector.multi_reduction <maximumf>, %85, %cst_33 [1] : vector<8x8xf32> to vector<8xf32>
    %87 = vector.shape_cast %86 : vector<8xf32> to vector<8x1xf32>
    %88 = vector.broadcast %87 : vector<8x1xf32> to vector<8x8xf32>
    %89 = arith.subf %85, %88 : vector<8x8xf32>
    %90 = math.exp %89 : vector<8x8xf32>
    %cst_34 = arith.constant dense<0.000000e+00> : vector<8xf32>
    %91 = vector.multi_reduction <add>, %90, %cst_34 [1] : vector<8x8xf32> to vector<8xf32>
    %92 = vector.shape_cast %91 : vector<8xf32> to vector<8x1xf32>
    %93 = tpu.reciprocal %92 {approx = true} : vector<8x1xf32> -> vector<8x1xf32>
    %94 = vector.broadcast %93 : vector<8x1xf32> to vector<8x8xf32>
    %95 = arith.mulf %90, %94 : vector<8x8xf32>
    %96 = arith.truncf %95 : vector<8x8xf32> to vector<8x8xbf16>
    %cst_35 = arith.constant dense<0.000000e+00> : vector<8x128xf32>
    %97 = tpu.matmul %96, %78, %cst_35 {dimension_numbers = #tpu.dot_dimension_numbers<[1], [0], [0], [1], [0, 0, 1, 1], [], []>} : vector<8x8xbf16>, vector<8x128xbf16>, vector<8x128xf32> -> vector<8x128xf32>
    %98 = arith.truncf %97 : vector<8x128xf32> to vector<8x128xbf16>
    %c1 = arith.constant 1 : index
    %c0_36 = arith.constant 0 : index
    %c0_37 = arith.constant 0 : index
    %99 = vector.load %arg7[%c1, %c0_36, %c0_37] : memref<4x128x128xbf16, #tpu.memory_space<vmem>>, vector<1x128x128xbf16>
    %100 = vector.shape_cast %99 : vector<1x128x128xbf16> to vector<128x128xbf16>
    %cst_38 = arith.constant dense<0.000000e+00> : vector<8x128xf32>
    %101 = tpu.matmul %98, %100, %cst_38 {dimension_numbers = #tpu.dot_dimension_numbers<[1], [0], [0], [1], [0, 0, 1, 1], [], []>} : vector<8x128xbf16>, vector<128x128xbf16>, vector<8x128xf32> -> vector<8x128xf32>
    %102 = arith.addf %72, %101 : vector<8x128xf32>
    %103 = vector.extract_strided_slice %39 {offsets = [0, 256], sizes = [8, 128], strides = [1, 1]} : vector<8x1536xf32> to vector<8x128xf32>
    %104 = arith.truncf %103 : vector<8x128xf32> to vector<8x128xbf16>
    %105 = vector.extract_strided_slice %39 {offsets = [0, 768], sizes = [8, 128], strides = [1, 1]} : vector<8x1536xf32> to vector<8x128xf32>
    %106 = arith.truncf %105 : vector<8x128xf32> to vector<8x128xbf16>
    %107 = vector.extract_strided_slice %39 {offsets = [0, 1280], sizes = [8, 128], strides = [1, 1]} : vector<8x1536xf32> to vector<8x128xf32>
    %108 = arith.truncf %107 : vector<8x128xf32> to vector<8x128xbf16>
    %cst_39 = arith.constant dense<0.000000e+00> : vector<8x8xf32>
    %109 = tpu.matmul %104, %106, %cst_39 {dimension_numbers = #tpu.dot_dimension_numbers<[1], [1], [0], [0], [0, 0, 1, 0], [], []>} : vector<8x128xbf16>, vector<8x128xbf16>, vector<8x8xf32> -> vector<8x8xf32>
    %c0_i32_40 = arith.constant 0 : i32
    %110 = vector.broadcast %c0_i32_40 : i32 to vector<1x8xi32>
    %111 = arith.cmpi eq, %3, %110 : vector<1x8xi32>
    %cst_41 = arith.constant -1.000000e+09 : f32
    %112 = vector.shape_cast %111 : vector<1x8xi1> to vector<1x8xi1>
    %113 = vector.broadcast %112 : vector<1x8xi1> to vector<8x8xi1>
    %114 = vector.broadcast %cst_41 : f32 to vector<8x8xf32>
    %115 = arith.select %113, %114, %109 : vector<8x8xi1>, vector<8x8xf32>
    %cst_42 = arith.constant dense<0xFF800000> : vector<8xf32>
    %116 = vector.multi_reduction <maximumf>, %115, %cst_42 [1] : vector<8x8xf32> to vector<8xf32>
    %117 = vector.shape_cast %116 : vector<8xf32> to vector<8x1xf32>
    %118 = vector.broadcast %117 : vector<8x1xf32> to vector<8x8xf32>
    %119 = arith.subf %115, %118 : vector<8x8xf32>
    %120 = math.exp %119 : vector<8x8xf32>
    %cst_43 = arith.constant dense<0.000000e+00> : vector<8xf32>
    %121 = vector.multi_reduction <add>, %120, %cst_43 [1] : vector<8x8xf32> to vector<8xf32>
    %122 = vector.shape_cast %121 : vector<8xf32> to vector<8x1xf32>
    %123 = tpu.reciprocal %122 {approx = true} : vector<8x1xf32> -> vector<8x1xf32>
    %124 = vector.broadcast %123 : vector<8x1xf32> to vector<8x8xf32>
    %125 = arith.mulf %120, %124 : vector<8x8xf32>
    %126 = arith.truncf %125 : vector<8x8xf32> to vector<8x8xbf16>
    %cst_44 = arith.constant dense<0.000000e+00> : vector<8x128xf32>
    %127 = tpu.matmul %126, %108, %cst_44 {dimension_numbers = #tpu.dot_dimension_numbers<[1], [0], [0], [1], [0, 0, 1, 1], [], []>} : vector<8x8xbf16>, vector<8x128xbf16>, vector<8x128xf32> -> vector<8x128xf32>
    %128 = arith.truncf %127 : vector<8x128xf32> to vector<8x128xbf16>
    %c2 = arith.constant 2 : index
    %c0_45 = arith.constant 0 : index
    %c0_46 = arith.constant 0 : index
    %129 = vector.load %arg7[%c2, %c0_45, %c0_46] : memref<4x128x128xbf16, #tpu.memory_space<vmem>>, vector<1x128x128xbf16>
    %130 = vector.shape_cast %129 : vector<1x128x128xbf16> to vector<128x128xbf16>
    %cst_47 = arith.constant dense<0.000000e+00> : vector<8x128xf32>
    %131 = tpu.matmul %128, %130, %cst_47 {dimension_numbers = #tpu.dot_dimension_numbers<[1], [0], [0], [1], [0, 0, 1, 1], [], []>} : vector<8x128xbf16>, vector<128x128xbf16>, vector<8x128xf32> -> vector<8x128xf32>
    %132 = arith.addf %102, %131 : vector<8x128xf32>
    %133 = vector.extract_strided_slice %39 {offsets = [0, 384], sizes = [8, 128], strides = [1, 1]} : vector<8x1536xf32> to vector<8x128xf32>
    %134 = arith.truncf %133 : vector<8x128xf32> to vector<8x128xbf16>
    %135 = vector.extract_strided_slice %39 {offsets = [0, 896], sizes = [8, 128], strides = [1, 1]} : vector<8x1536xf32> to vector<8x128xf32>
    %136 = arith.truncf %135 : vector<8x128xf32> to vector<8x128xbf16>
    %137 = vector.extract_strided_slice %39 {offsets = [0, 1408], sizes = [8, 128], strides = [1, 1]} : vector<8x1536xf32> to vector<8x128xf32>
    %138 = arith.truncf %137 : vector<8x128xf32> to vector<8x128xbf16>
    %cst_48 = arith.constant dense<0.000000e+00> : vector<8x8xf32>
    %139 = tpu.matmul %134, %136, %cst_48 {dimension_numbers = #tpu.dot_dimension_numbers<[1], [1], [0], [0], [0, 0, 1, 0], [], []>} : vector<8x128xbf16>, vector<8x128xbf16>, vector<8x8xf32> -> vector<8x8xf32>
    %c0_i32_49 = arith.constant 0 : i32
    %140 = vector.broadcast %c0_i32_49 : i32 to vector<1x8xi32>
    %141 = arith.cmpi eq, %3, %140 : vector<1x8xi32>
    %cst_50 = arith.constant -1.000000e+09 : f32
    %142 = vector.shape_cast %141 : vector<1x8xi1> to vector<1x8xi1>
    %143 = vector.broadcast %142 : vector<1x8xi1> to vector<8x8xi1>
    %144 = vector.broadcast %cst_50 : f32 to vector<8x8xf32>
    %145 = arith.select %143, %144, %139 : vector<8x8xi1>, vector<8x8xf32>
    %cst_51 = arith.constant dense<0xFF800000> : vector<8xf32>
    %146 = vector.multi_reduction <maximumf>, %145, %cst_51 [1] : vector<8x8xf32> to vector<8xf32>
    %147 = vector.shape_cast %146 : vector<8xf32> to vector<8x1xf32>
    %148 = vector.broadcast %147 : vector<8x1xf32> to vector<8x8xf32>
    %149 = arith.subf %145, %148 : vector<8x8xf32>
    %150 = math.exp %149 : vector<8x8xf32>
    %cst_52 = arith.constant dense<0.000000e+00> : vector<8xf32>
    %151 = vector.multi_reduction <add>, %150, %cst_52 [1] : vector<8x8xf32> to vector<8xf32>
    %152 = vector.shape_cast %151 : vector<8xf32> to vector<8x1xf32>
    %153 = tpu.reciprocal %152 {approx = true} : vector<8x1xf32> -> vector<8x1xf32>
    %154 = vector.broadcast %153 : vector<8x1xf32> to vector<8x8xf32>
    %155 = arith.mulf %150, %154 : vector<8x8xf32>
    %156 = arith.truncf %155 : vector<8x8xf32> to vector<8x8xbf16>
    %cst_53 = arith.constant dense<0.000000e+00> : vector<8x128xf32>
    %157 = tpu.matmul %156, %138, %cst_53 {dimension_numbers = #tpu.dot_dimension_numbers<[1], [0], [0], [1], [0, 0, 1, 1], [], []>} : vector<8x8xbf16>, vector<8x128xbf16>, vector<8x128xf32> -> vector<8x128xf32>
    %158 = arith.truncf %157 : vector<8x128xf32> to vector<8x128xbf16>
    %c3 = arith.constant 3 : index
    %c0_54 = arith.constant 0 : index
    %c0_55 = arith.constant 0 : index
    %159 = vector.load %arg7[%c3, %c0_54, %c0_55] : memref<4x128x128xbf16, #tpu.memory_space<vmem>>, vector<1x128x128xbf16>
    %160 = vector.shape_cast %159 : vector<1x128x128xbf16> to vector<128x128xbf16>
    %cst_56 = arith.constant dense<0.000000e+00> : vector<8x128xf32>
    %161 = tpu.matmul %158, %160, %cst_56 {dimension_numbers = #tpu.dot_dimension_numbers<[1], [0], [0], [1], [0, 0, 1, 1], [], []>} : vector<8x128xbf16>, vector<128x128xbf16>, vector<8x128xf32> -> vector<8x128xf32>
    %162 = arith.addf %132, %161 : vector<8x128xf32>
    %c0_57 = arith.constant 0 : index
    %c0_58 = arith.constant 0 : index
    %163 = vector.load %arg9[%c0_57, %c0_58] : memref<1x128xf32, #tpu.memory_space<vmem>>, vector<1x128xf32>
    %c0_59 = arith.constant 0 : index
    %c0_60 = arith.constant 0 : index
    %164 = vector.load %arg10[%c0_59, %c0_60] : memref<1x128xf32, #tpu.memory_space<vmem>>, vector<1x128xf32>
    %cst_61 = arith.constant dense<0.000000e+00> : vector<8xf32>
    %165 = vector.multi_reduction <add>, %162, %cst_61 [1] : vector<8x128xf32> to vector<8xf32>
    %166 = vector.shape_cast %165 : vector<8xf32> to vector<8x1xf32>
    %cst_62 = arith.constant 3.125000e-02 : f32
    %167 = vector.broadcast %cst_62 : f32 to vector<8x1xf32>
    %168 = arith.mulf %166, %167 : vector<8x1xf32>
    %169 = vector.broadcast %168 : vector<8x1xf32> to vector<8x128xf32>
    %170 = arith.subf %162, %169 : vector<8x128xf32>
    %cst_63 = arith.constant 0.000000e+00 : f32
    %171 = vector.shape_cast %6 : vector<1x128xi1> to vector<1x128xi1>
    %172 = vector.broadcast %171 : vector<1x128xi1> to vector<8x128xi1>
    %173 = vector.broadcast %cst_63 : f32 to vector<8x128xf32>
    %174 = arith.select %172, %170, %173 : vector<8x128xi1>, vector<8x128xf32>
    %175 = arith.mulf %174, %174 : vector<8x128xf32>
    %cst_64 = arith.constant dense<0.000000e+00> : vector<8xf32>
    %176 = vector.multi_reduction <add>, %175, %cst_64 [1] : vector<8x128xf32> to vector<8xf32>
    %177 = vector.shape_cast %176 : vector<8xf32> to vector<8x1xf32>
    %cst_65 = arith.constant 0.0322580636 : f32
    %178 = vector.broadcast %cst_65 : f32 to vector<8x1xf32>
    %179 = arith.mulf %177, %178 : vector<8x1xf32>
    %180 = math.sqrt %179 : vector<8x1xf32>
    %cst_66 = arith.constant 9.99999997E-7 : f32
    %181 = vector.broadcast %cst_66 : f32 to vector<8x1xf32>
    %182 = arith.addf %180, %181 : vector<8x1xf32>
    %183 = tpu.reciprocal %182 {approx = true} : vector<8x1xf32> -> vector<8x1xf32>
    %184 = vector.broadcast %183 : vector<8x1xf32> to vector<8x128xf32>
    %185 = arith.mulf %174, %184 : vector<8x128xf32>
    %186 = vector.broadcast %163 : vector<1x128xf32> to vector<8x128xf32>
    %187 = arith.mulf %186, %185 : vector<8x128xf32>
    %188 = vector.broadcast %164 : vector<1x128xf32> to vector<8x128xf32>
    %189 = arith.addf %187, %188 : vector<8x128xf32>
    %190 = arith.truncf %189 : vector<8x128xf32> to vector<8x128xbf16>
    %c0_67 = arith.constant 0 : index
    %c0_68 = arith.constant 0 : index
    %191 = vector.load %arg11[%c0_67, %c0_68] : memref<128x2048xbf16, #tpu.memory_space<vmem>>, vector<128x2048xbf16>
    %cst_69 = arith.constant dense<0.000000e+00> : vector<8x2048xf32>
    %192 = tpu.matmul %190, %191, %cst_69 {dimension_numbers = #tpu.dot_dimension_numbers<[1], [0], [0], [1], [0, 0, 1, 1], [], []>} : vector<8x128xbf16>, vector<128x2048xbf16>, vector<8x2048xf32> -> vector<8x2048xf32>
    %c0_70 = arith.constant 0 : index
    %c0_71 = arith.constant 0 : index
    %193 = vector.load %arg12[%c0_70, %c0_71] : memref<1x2048xf32, #tpu.memory_space<vmem>>, vector<1x2048xf32>
    %194 = vector.broadcast %193 : vector<1x2048xf32> to vector<8x2048xf32>
    %195 = arith.addf %192, %194 : vector<8x2048xf32>
    %cst_72 = arith.constant 0.000000e+00 : f32
    %196 = vector.broadcast %cst_72 : f32 to vector<8x2048xf32>
    %197 = arith.maximumf %195, %196 : vector<8x2048xf32>
    %198 = arith.truncf %197 : vector<8x2048xf32> to vector<8x2048xbf16>
    %c0_73 = arith.constant 0 : index
    %c0_74 = arith.constant 0 : index
    %199 = vector.load %arg13[%c0_73, %c0_74] : memref<2048x128xbf16, #tpu.memory_space<vmem>>, vector<2048x128xbf16>
    %cst_75 = arith.constant dense<0.000000e+00> : vector<8x128xf32>
    %200 = tpu.matmul %198, %199, %cst_75 {dimension_numbers = #tpu.dot_dimension_numbers<[1], [0], [0], [1], [0, 0, 1, 1], [], []>} : vector<8x2048xbf16>, vector<2048x128xbf16>, vector<8x128xf32> -> vector<8x128xf32>
    %201 = arith.addf %162, %200 : vector<8x128xf32>
    %c0_76 = arith.constant 0 : index
    %c0_77 = arith.constant 0 : index
    %202 = vector.load %arg14[%c0_76, %c0_77] : memref<1x128xf32, #tpu.memory_space<vmem>>, vector<1x128xf32>
    %203 = vector.broadcast %202 : vector<1x128xf32> to vector<8x128xf32>
    %204 = arith.addf %201, %203 : vector<8x128xf32>
    %c0_78 = arith.constant 0 : index
    %c0_79 = arith.constant 0 : index
    %c0_80 = arith.constant 0 : index
    %205 = vector.load %arg15[%c0_78, %c0_79, %c0_80] : memref<1x8x128xf32, #tpu.memory_space<vmem>>, vector<1x8x128xf32>
    %206 = vector.shape_cast %205 : vector<1x8x128xf32> to vector<8x128xf32>
    %207 = vector.shape_cast %204 : vector<8x128xf32> to vector<1x8x128xf32>
    tpu.vector_store %arg15[%c0_78, %c0_79, %c0_80], %207 {strides = array<i32>} : memref<1x8x128xf32, #tpu.memory_space<vmem>>, vector<1x8x128xf32>,
    return
  }
  func.func @transform_0(%arg0: i32) -> (i32, i32, i32) {
    %c0_i32 = arith.constant 0 : i32
    %c0_i32_0 = arith.constant 0 : i32
    %c0_i32_1 = arith.constant 0 : i32
    return %arg0, %c0_i32, %c0_i32_0 : i32, i32, i32
  }
  func.func @transform_1(%arg0: i32) -> (i32, i32, i32) {
    %c0_i32 = arith.constant 0 : i32
    %c0_i32_0 = arith.constant 0 : i32
    %c0_i32_1 = arith.constant 0 : i32
    return %arg0, %c0_i32, %c0_i32_0 : i32, i32, i32
  }
  func.func @transform_2(%arg0: i32) -> (i32, i32) {
    %c0_i32 = arith.constant 0 : i32
    %c0_i32_0 = arith.constant 0 : i32
    %c0_i32_1 = arith.constant 0 : i32
    return %c0_i32, %c0_i32_0 : i32, i32
  }
  func.func @transform_3(%arg0: i32) -> (i32, i32) {
    %c0_i32 = arith.constant 0 : i32
    %c0_i32_0 = arith.constant 0 : i32
    %c0_i32_1 = arith.constant 0 : i32
    return %c0_i32, %c0_i32_0 : i32, i32
  }
  func.func @transform_4(%arg0: i32) -> (i32, i32) {
    %c0_i32 = arith.constant 0 : i32
    %c0_i32_0 = arith.constant 0 : i32
    %c0_i32_1 = arith.constant 0 : i32
    return %c0_i32, %c0_i32_0 : i32, i32
  }
  func.func @transform_5(%arg0: i32) -> (i32, i32) {
    %c0_i32 = arith.constant 0 : i32
    %c0_i32_0 = arith.constant 0 : i32
    %c0_i32_1 = arith.constant 0 : i32
    return %c0_i32, %c0_i32_0 : i32, i32
  }
  func.func @transform_6(%arg0: i32) -> (i32, i32, i32) {
    %c0_i32 = arith.constant 0 : i32
    %c0_i32_0 = arith.constant 0 : i32
    %c0_i32_1 = arith.constant 0 : i32
    %c0_i32_2 = arith.constant 0 : i32
    return %c0_i32, %c0_i32_0, %c0_i32_1 : i32, i32, i32
  }
  func.func @transform_7(%arg0: i32) -> (i32, i32) {
    %c0_i32 = arith.constant 0 : i32
    %c0_i32_0 = arith.constant 0 : i32
    %c0_i32_1 = arith.constant 0 : i32
    return %c0_i32, %c0_i32_0 : i32, i32
  }
  func.func @transform_8(%arg0: i32) -> (i32, i32) {
    %c0_i32 = arith.constant 0 : i32
    %c0_i32_0 = arith.constant 0 : i32
    %c0_i32_1 = arith.constant 0 : i32
    return %c0_i32, %c0_i32_0 : i32, i32
  }
  func.func @transform_9(%arg0: i32) -> (i32, i32) {
    %c0_i32 = arith.constant 0 : i32
    %c0_i32_0 = arith.constant 0 : i32
    %c0_i32_1 = arith.constant 0 : i32
    return %c0_i32, %c0_i32_0 : i32, i32
  }
  func.func @transform_10(%arg0: i32) -> (i32, i32) {
    %c0_i32 = arith.constant 0 : i32
    %c0_i32_0 = arith.constant 0 : i32
    %c0_i32_1 = arith.constant 0 : i32
    return %c0_i32, %c0_i32_0 : i32, i32
  }
  func.func @transform_11(%arg0: i32) -> (i32, i32) {
    %c0_i32 = arith.constant 0 : i32
    %c0_i32_0 = arith.constant 0 : i32
    %c0_i32_1 = arith.constant 0 : i32
    return %c0_i32, %c0_i32_0 : i32, i32
  }
  func.func @transform_12(%arg0: i32) -> (i32, i32) {
    %c0_i32 = arith.constant 0 : i32
    %c0_i32_0 = arith.constant 0 : i32
    %c0_i32_1 = arith.constant 0 : i32
    return %c0_i32, %c0_i32_0 : i32, i32
  }
  func.func @transform_13(%arg0: i32) -> (i32, i32) {
    %c0_i32 = arith.constant 0 : i32
    %c0_i32_0 = arith.constant 0 : i32
    %c0_i32_1 = arith.constant 0 : i32
    return %c0_i32, %c0_i32_0 : i32, i32
  }
  func.func @transform_14(%arg0: i32) -> (i32, i32, i32) {
    %c0_i32 = arith.constant 0 : i32
    %c0_i32_0 = arith.constant 0 : i32
    %c0_i32_1 = arith.constant 0 : i32
    return %arg0, %c0_i32, %c0_i32_0 : i32, i32, i32
  }
}

</mosaic_0001>

<bundles_post_ra>
// kernel: encoder_layer.1
= control target key start
LH: loop header
LB: loop body
LE: loop exit
PB: predicated region body
PF: predicated region fallthrough
CT: control target
= control target key end

     0   :  { %s7798_s0 = inlined_call_operand.vmem [shape: f32[2,8,128], index: 0, kind: input, shape index: {}]   ;;  %s7799_s1 = inlined_call_operand.vmem [shape: s32[2,1,8], index: 1, kind: input, shape index: {}]   ;;  %s7800_s2 = inlined_call_operand.vmem [shape: f32[1,128], index: 2, kind: input, shape index: {}]   ;;  %s7801_s3 = inlined_call_operand.vmem [shape: f32[1,128], index: 3, kind: input, shape index: {}]   ;;  %s7802_s4 = inlined_call_operand.vmem [shape: bf16[128,1536], index: 4, kind: input, shape index: {}]   ;;  %s7803_s5 = inlined_call_operand.vmem [shape: f32[1,1536], index: 5, kind: input, shape index: {}]   ;;  %s7804_s6 = inlined_call_operand.vmem [shape: bf16[4,128,128], index: 6, kind: input, shape index: {}]   ;;  %s7805_s7 = inlined_call_operand.vmem [shape: f32[1,128], index: 7, kind: input, shape index: {}]   ;;  %s7806_s8 = inlined_call_operand.vmem [shape: f32[1,128], index: 8, kind: input, shape index: {}]   ;;  %s7807_s9 = inlined_call_operand.vmem [shape: f32[1,128], index: 9, kind: input, shape index: {}]   ;;  %s7808_s10 = inlined_call_operand.vmem [shape: bf16[128,2048], index: 10, kind: input, shape index: {}]   ;;  %s7809_s11 = inlined_call_operand.vmem [shape: f32[1,2048], index: 11, kind: input, shape index: {}]   ;;  %s7810_s12 = inlined_call_operand.vmem [shape: bf16[2048,128], index: 12, kind: input, shape index: {}]   ;;  %s7811_s13 = inlined_call_operand.vmem [shape: f32[1,128], index: 13, kind: input, shape index: {}]   ;;  %s7812_s14 = inlined_call_operand.hbm [shape: f32[2,8,128], index: 14, kind: output, shape index: {}]  }
   0x1   :  { %7817 = sst [smem:[#allocation9_spill]] %s7798_s0 }
   0x2   :  { %19 = vsyncpa [#allocation3], 0 }
   0x3   :  { %21 = vsyncpa [#allocation3 + $0x1], 0  ;;  %s6263_s29 = smov 0   ;;  %s6265_s30 = smov 0  }
   0x4   :  { %s6267_s15 = smov 0   ;;  %s6269_s16 = smov 0  }
   0x5 LB: > { %7818 = sst [smem:[#allocation5_spill]] %s6178_s15  ;;  %s6284_s17 = sadd.s32 4294967295, %s6182_s16   ;;  %s6182_s16 = sphi %s6269_s16, %s7828_s16   ;;  %s6178_s15 = sphi %s6267_s15, %s7830_s15   ;;  %s6174_s30 = sphi %s6265_s30, %s7832_s30   ;;  %s6170_s29 = sphi %s6263_s29, %s7831_s29  }
   0x6   : > { %s4943_s18 = sadd.s32 4294967294, %s6182_s16   ;;  %s6288_s19 = sadd.s32 1, %s6182_s16  }
   0x7   : > { %7819 = sst [smem:[#allocation6_spill]] %s6288_s19  ;;  %s338_s20 = sadd.s32 1, %s6178_s15 }
   0x8   : > { %s335_s21 = ssub.s32 %s6182_s16, %s6288_s19  ;;  %p348_p0 = scmp.ne.s32.totalorder %s6178_s15, %s6174_s30 }
   0x9   : > { %p336_p1 = scmp.eq.s32.totalorder %s335_s21, 0  ;;  %p349_p2 = scmp.eq.s32.totalorder %s6284_s17, 1 }
   0xa   : > { %p354_p3 = scmp.ne.s32.totalorder %s6174_s30, %s6170_s29  ;;  %p355_p4 = scmp.eq.s32.totalorder %s4943_s18, 1 }
   0xb   : > { %s6299_s22 = scalar_select %p336_p1, %s6178_s15, %s338_s20  }
   0xc   : > { %p6301_p5 = por %p349_p2, %p348_p0  ;;  %p6305_p6 = por %p355_p4, %p354_p3 }
   0xd   : > { %7820 = sst [smem:[#allocation7_spill]] %s6299_s22  ;;  %p4946_p7 = scmp.ge.s32.totalorder %s6182_s16, 1 }
   0xe   : > { %s7822_s24 = scalar_select %p6305_p6, 1, 0 }
   0xf   : > { %p422_p8 = scmp.lt.s32.totalorder %s6182_s16, 3 }
  0x10   : > { %7823 = sst [smem:[#allocation8_spill]] %s7822_s24 }
  0x11   : > { %p423_p9 = pnand %p4946_p7, %p422_p8 }
  0x12   : > { %p470_p10 = scmp.lt.s32.totalorder (!%p423_p9), %s6284_s17, 1  ;;  %s7824_s0 = sld [smem:[#allocation9_spill]] (!%p423_p9) }
  0x13   : > { %426 = sbr.rel (%p423_p9) target bundleno = 3048 (0xbe8), region = 76  ;;  %s5392_s15 = sshll.u32 (!%p423_p9), %s6284_s17, 7 }
  0x14   : > { %s4873_s21 = scalar_lea.hbm (!%p423_p9), %s7812_s14, %s5392_s15 }
  0x18   : > { %s6313_s25 = scalar_select %p470_p10, %s6284_s17, 1  ;;  %v480_v1 = vlaneseq  ;;  %v5793_v8 = vld [vmem:[%s7802_s4 + $0x2a4] ss:$48 sps:$4 sm:$0xff]   ;;  %v5795_v9 = vld [vmem:[%s7802_s4 + $0x2ac] ss:$48 sps:$4 sm:$0xff]   ;;  %v6184_v34 = vmov 0  }
  0x19   : > { %v5797_v10 = vld [vmem:[%s7802_s4 + $0x2a0] ss:$48 sps:$4 sm:$0xff]   ;;  %v5798_v11 = vld [vmem:[%s7802_s4 + $0x2a8] ss:$48 sps:$4 sm:$0xff]   ;;  %1161 = vmatprep.subr.bf16.mxu0 %v5793_v8  ;;  %1202 = vmatprep.subr.bf16.mxu1 %v5795_v9  ;;  %v5799_v12 = vld [vmem:[%s7802_s4 + $0x244] ss:$48 sps:$4 sm:$0xff]  }
  0x1a   : > { %s4948_s26 = sshll.u32 %s6313_s25, 3  ;;  %v6323_v2 = vand.u32 127, %v480_v1  ;;  %1162 = vmatpush1.bf16.msra.mxu0 %v5797_v10  ;;  %1203 = vmatpush1.bf16.msra.mxu1 %v5798_v11  ;;  %v5801_v13 = vld [vmem:[%s7802_s4 + $0x24c] ss:$48 sps:$4 sm:$0xff]   ;;  %v5803_v14 = vld [vmem:[%s7802_s4 + $0x240] ss:$48 sps:$4 sm:$0xff]  }
  0x1b   : > { %s6319_s18 = scalar_lea.vmem %s7824_s0, %s4948_s26  ;;  %v5804_v15 = vld [vmem:[%s7802_s4 + $0x248] ss:$48 sps:$4 sm:$0xff]   ;;  %1163 = vmatprep.subr.bf16.mxu0 %v5799_v12  ;;  %1204 = vmatprep.subr.bf16.mxu1 %v5801_v13  ;;  %v5805_v16 = vld [vmem:[%s7802_s4 + $0x1e4] ss:$48 sps:$4 sm:$0xff]   ;;  %v5807_v17 = vld [vmem:[%s7802_s4 + $0x1ec] ss:$48 sps:$4 sm:$0xff]   ;;  %s476_s26 = scalar_lea.vmem %s7799_s1, %s6313_s25 }
  0x1c   : > { %v478_v0 = vld [vmem:[%s6319_s18] sm:$0xff]  ;;  %vm482_vm0 = vcmp.lt.s32.totalorder %v6323_v2, 32  ;;  %v5810_v19 = vld [vmem:[%s7802_s4 + $0x1e8] ss:$48 sps:$4 sm:$0xff]   ;;  %v5813_v21 = vld [vmem:[%s7802_s4 + $0x18c] ss:$48 sps:$4 sm:$0xff]   ;;  %1193 = vmatprep.mubr.bf16.mxu0 %v6184_v34  ;;  %1234 = vmatprep.mubr.bf16.mxu1 %v6184_v34 }
  0x1d   : > { %485 = vadd.xlane.f32.xlu0 %v478_v0  ;;  %v5809_v18 = vld [vmem:[%s7802_s4 + $0x1e0] ss:$48 sps:$4 sm:$0xff]   ;;  %v5811_v20 = vld [vmem:[%s7802_s4 + $0x184] ss:$48 sps:$4 sm:$0xff]   ;;  %v5816_v23 = vld [vmem:[%s7802_s4 + $0x188] ss:$48 sps:$4 sm:$0xff]  }
  0x1e   : > { %1164 = vmatpush1.bf16.msra.mxu0 %v5803_v14  ;;  %1205 = vmatpush1.bf16.msra.mxu1 %v5804_v15  ;;  %v5815_v22 = vld [vmem:[%s7802_s4 + $0x180] ss:$48 sps:$4 sm:$0xff]   ;;  %v5817_v24 = vld [vmem:[%s7802_s4 + $0x124] ss:$48 sps:$4 sm:$0xff]   ;;  %v5819_v25 = vld [vmem:[%s7802_s4 + $0x12c] ss:$48 sps:$4 sm:$0xff]  }
  0x1f   : > { %1165 = vmatprep.subr.bf16.mxu0 %v5805_v16  ;;  %1206 = vmatprep.subr.bf16.mxu1 %v5807_v17  ;;  %v5821_v26 = vld [vmem:[%s7802_s4 + $0x120] ss:$48 sps:$4 sm:$0xff]   ;;  %v5822_v27 = vld [vmem:[%s7802_s4 + $0x128] ss:$48 sps:$4 sm:$0xff]   ;;  %v5823_v28 = vld [vmem:[%s7802_s4 + $0xc4] ss:$48 sps:$4 sm:$0xff]  }
  0x20   : > { %v5825_v29 = vld [vmem:[%s7802_s4 + $0xcc] ss:$48 sps:$4 sm:$0xff]   ;;  %v5827_v30 = vld [vmem:[%s7802_s4 + $0xc0] ss:$48 sps:$4 sm:$0xff]   ;;  %v5828_v31 = vld [vmem:[%s7802_s4 + $0xc8] ss:$48 sps:$4 sm:$0xff]  }
  0x21   : > { %v5829_v32 = vld [vmem:[%s7802_s4 + $0x64] ss:$48 sps:$4 sm:$0xff]   ;;  %v5831_v33 = vld [vmem:[%s7802_s4 + $0x6c] ss:$48 sps:$4 sm:$0xff]   ;;  %v5833_v35 = vld [vmem:[%s7802_s4 + $0x60] ss:$48 sps:$4 sm:$0xff]  }
  0x22   : > { %1166 = vmatpush1.bf16.msra.mxu0 %v5809_v18  ;;  %1207 = vmatpush1.bf16.msra.mxu1 %v5810_v19  ;;  %v5834_v36 = vld [vmem:[%s7802_s4 + $0x68] ss:$48 sps:$4 sm:$0xff]   ;;  %v5835_v37 = vld [vmem:[%s7802_s4 + $0x4] ss:$48 sps:$4 sm:$0xff]   ;;  %v5837_v38 = vld [vmem:[%s7802_s4 + $0xc] ss:$48 sps:$4 sm:$0xff]  }
  0x23   : > { %1167 = vmatprep.subr.bf16.mxu0 %v5811_v20  ;;  %1208 = vmatprep.subr.bf16.mxu1 %v5813_v21  ;;  %v5839_v39 = vld [vmem:[%s7802_s4] ss:$48 sps:$4 sm:$0xff]   ;;  %v5840_v40 = vld [vmem:[%s7802_s4 + $0x8] ss:$48 sps:$4 sm:$0xff]   ;;  %v5843_v41 = vld [vmem:[%s7802_s4 + $0x2b4] ss:$48 sps:$4 sm:$0xff]  }
  0x24   : > { %v5846_v42 = vld [vmem:[%s7802_s4 + $0x2bc] ss:$48 sps:$4 sm:$0xff]   ;;  %v4949_v52 = vld [vmem:[%s7800_s2] ss:$0 sm:$0xff]  ;;  %v5844_v58 = vld [vmem:[%s7802_s4 + $0x2b8] ss:$48 sps:$4 sm:$0xff]  }
  0x25   : > { %v4950_v54 = vld [vmem:[%s7801_s3] ss:$0 sm:$0xff]  ;;  %v5849_v60 = vld [vmem:[%s7802_s4 + $0x254] ss:$48 sps:$4 sm:$0xff]   ;;  %v5852_v61 = vld [vmem:[%s7802_s4 + $0x25c] ss:$48 sps:$4 sm:$0xff]  }
  0x26   : > { %1168 = vmatpush1.bf16.msra.mxu0 %v5815_v22  ;;  %1209 = vmatpush1.bf16.msra.mxu1 %v5816_v23  ;;  %v5841_v57 = vld [vmem:[%s7802_s4 + $0x2b0] ss:$48 sps:$4 sm:$0xff]   ;;  %v5850_v63 = vld [vmem:[%s7802_s4 + $0x258] ss:$48 sps:$4 sm:$0xff]   ;;  %v5867_v10 = vld [vmem:[%s7802_s4 + $0x134] ss:$48 sps:$4 sm:$0xff]  }
  0x27   : > { %1169 = vmatprep.subr.bf16.mxu0 %v5817_v24  ;;  %1210 = vmatprep.subr.bf16.mxu1 %v5819_v25  ;;  %v5847_v62 = vld [vmem:[%s7802_s4 + $0x250] ss:$48 sps:$4 sm:$0xff]   ;;  %v5862_v9 = vld [vmem:[%s7802_s4 + $0x198] ss:$48 sps:$4 sm:$0xff]   ;;  %v5870_v11 = vld [vmem:[%s7802_s4 + $0x13c] ss:$48 sps:$4 sm:$0xff]  }
  0x28   : > { %v5859_v8 = vld [vmem:[%s7802_s4 + $0x190] ss:$48 sps:$4 sm:$0xff]   ;;  %v5868_v13 = vld [vmem:[%s7802_s4 + $0x138] ss:$48 sps:$4 sm:$0xff]   ;;  %v5873_v14 = vld [vmem:[%s7802_s4 + $0xd4] ss:$48 sps:$4 sm:$0xff]  }
  0x29   : > { %v5865_v12 = vld [vmem:[%s7802_s4 + $0x130] ss:$48 sps:$4 sm:$0xff]   ;;  %v5876_v15 = vld [vmem:[%s7802_s4 + $0xdc] ss:$48 sps:$4 sm:$0xff]   ;;  %v5874_v17 = vld [vmem:[%s7802_s4 + $0xd8] ss:$48 sps:$4 sm:$0xff]  }
  0x2a   : > { %1170 = vmatpush1.bf16.msra.mxu0 %v5821_v26  ;;  %1211 = vmatpush1.bf16.msra.mxu1 %v5822_v27  ;;  %v5871_v16 = vld [vmem:[%s7802_s4 + $0xd0] ss:$48 sps:$4 sm:$0xff]   ;;  %v5879_v18 = vld [vmem:[%s7802_s4 + $0x74] ss:$48 sps:$4 sm:$0xff]   ;;  %v5882_v19 = vld [vmem:[%s7802_s4 + $0x7c] ss:$48 sps:$4 sm:$0xff]  }
  0x2b   : > { %1171 = vmatprep.subr.bf16.mxu0 %v5823_v28  ;;  %1212 = vmatprep.subr.bf16.mxu1 %v5825_v29  ;;  %v5877_v20 = vld [vmem:[%s7802_s4 + $0x70] ss:$48 sps:$4 sm:$0xff]   ;;  %v5880_v21 = vld [vmem:[%s7802_s4 + $0x78] ss:$48 sps:$4 sm:$0xff]   ;;  %v5885_v22 = vld [vmem:[%s7802_s4 + $0x14] ss:$48 sps:$4 sm:$0xff]  }
  0x2c   : > { %v5888_v23 = vld [vmem:[%s7802_s4 + $0x1c] ss:$48 sps:$4 sm:$0xff]   ;;  %v5883_v24 = vld [vmem:[%s7802_s4 + $0x10] ss:$48 sps:$4 sm:$0xff]   ;;  %v5886_v25 = vld [vmem:[%s7802_s4 + $0x18] ss:$48 sps:$4 sm:$0xff]  }
  0x2d   : > { %v5891_v26 = vld [vmem:[%s7802_s4 + $0x2c4] ss:$48 sps:$4 sm:$0xff]   ;;  %v5894_v27 = vld [vmem:[%s7802_s4 + $0x2cc] ss:$48 sps:$4 sm:$0xff]   ;;  %v5889_v28 = vld [vmem:[%s7802_s4 + $0x2c0] ss:$48 sps:$4 sm:$0xff]  }
  0x2e   : > { %1172 = vmatpush1.bf16.msra.mxu0 %v5827_v30  ;;  %1213 = vmatpush1.bf16.msra.mxu1 %v5828_v31  ;;  %v5892_v29 = vld [vmem:[%s7802_s4 + $0x2c8] ss:$48 sps:$4 sm:$0xff]   ;;  %v5897_v30 = vld [vmem:[%s7802_s4 + $0x264] ss:$48 sps:$4 sm:$0xff]   ;;  %v5900_v31 = vld [vmem:[%s7802_s4 + $0x26c] ss:$48 sps:$4 sm:$0xff]  }
  0x2f   : > { %1173 = vmatprep.subr.bf16.mxu0 %v5829_v32  ;;  %1214 = vmatprep.subr.bf16.mxu1 %v5831_v33  ;;  %v5895_v32 = vld [vmem:[%s7802_s4 + $0x260] ss:$48 sps:$4 sm:$0xff]   ;;  %v5898_v33 = vld [vmem:[%s7802_s4 + $0x268] ss:$48 sps:$4 sm:$0xff]   ;;  %vm6186_vm3 = vmmov 0   ;;  %vm1482_vm4 = vcmask 1043456  }
  0x30   : > { %vm1466_vm7 = vcmask 64512   ;;  %v2416_v2 = vld [vmem:[%s7808_s10 + $0x3c8] sm:$0xff]  ;;  %s6187_s0 = smov [#allocation2]  }
  0x31   : > { %s6126_s28 = sshll.u32 %s6187_s0, 4  ;;  %s6127_s28 = int_to_ptr.vmem [resolvable:$false] %s6126_s28 }
  0x32   : > { %1174 = vmatpush1.bf16.msra.mxu0 %v5833_v35  ;;  %1215 = vmatpush1.bf16.msra.mxu1 %v5834_v36  ;;  %v5903_v35 = vld [vmem:[%s7802_s4 + $0x204] ss:$48 sps:$4 sm:$0xff]   ;;  %v5906_v36 = vld [vmem:[%s7802_s4 + $0x20c] ss:$48 sps:$4 sm:$0xff]   ;;  %s6128_s17 = scalar_lea.vmem %s6127_s28, 256 }
  0x33   : > { %1175 = vmatprep.subr.bf16.mxu0 %v5835_v37  ;;  %1216 = vmatprep.subr.bf16.mxu1 %v5837_v38  ;;  %v5901_v37 = vld [vmem:[%s7802_s4 + $0x200] ss:$48 sps:$4 sm:$0xff]   ;;  %v5904_v38 = vld [vmem:[%s7802_s4 + $0x208] ss:$48 sps:$4 sm:$0xff]  }
  0x36   : > { %1176 = vmatpush1.bf16.msra.mxu0 %v5839_v39  ;;  %1217 = vmatpush1.bf16.msra.mxu1 %v5840_v40  ;;  %v5909_v39 = vld [vmem:[%s7802_s4 + $0x1a4] ss:$48 sps:$4 sm:$0xff]   ;;  %v5912_v40 = vld [vmem:[%s7802_s4 + $0x1ac] ss:$48 sps:$4 sm:$0xff]  }
  0x37   : > { %1243 = vmatprep.subr.bf16.mxu0 %v5843_v41  ;;  %1284 = vmatprep.subr.bf16.mxu1 %v5846_v42  ;;  %v5907_v41 = vld [vmem:[%s7802_s4 + $0x1a0] ss:$48 sps:$4 sm:$0xff]   ;;  %v5910_v42 = vld [vmem:[%s7802_s4 + $0x1a8] ss:$48 sps:$4 sm:$0xff]  }
  0xa6   : > { %v486_v3 = vpop.xlane.xlu0 %485 }
  0xa7   : > { %v487_v4 = vmul.f32 0.03125, %v486_v3  ;;  %v5858_v3 = vld [vmem:[%s7802_s4 + $0x1fc] ss:$48 sps:$4 sm:$0xff]  }
  0xa9   : > { %v488_v5 = vsub.f32 %v478_v0, %v487_v4  ;;  %v5855_v0 = vld [vmem:[%s7802_s4 + $0x1f4] ss:$48 sps:$4 sm:$0xff]   ;;  %v5853_v4 = vld [vmem:[%s7802_s4 + $0x1f0] ss:$48 sps:$4 sm:$0xff]  }
  0xab   : > { %v6328_v6 = vsel %vm482_vm0, %v488_v5, 0.0  ;;  %v5856_v5 = vld [vmem:[%s7802_s4 + $0x1f8] ss:$48 sps:$4 sm:$0xff]  }
  0xac   : > { %v492_v7 = vmul.f32 %v6328_v6, %v6328_v6 }
  0xae   : > { %493 = vadd.xlane.f32.xlu0 %v492_v7  ;;  %v5864_v7 = vld [vmem:[%s7802_s4 + $0x19c] ss:$48 sps:$4 sm:$0xff]  }
 0x137   : > { %v494_v43 = vpop.xlane.xlu0 %493 }
 0x138   : > { %v495_v44 = vmul.f32 0.032258064, %v494_v43  ;;  %v5915_v43 = vld [vmem:[%s7802_s4 + $0x144] ss:$48 sps:$4 sm:$0xff]  }
 0x13a   : > { %6097 = vrsqrt.f32 %v495_v44  ;;  %vm498_vm1 = vcmp.eq.f32.partialorder %v495_v44, inf  ;;  %v501_v47 = vand.u32 2147483648, %v495_v44  ;;  %vm500_vm2 = vcmp.eq.f32.partialorder %v495_v44, 0.0 }
 0x147   : > { %v6098_v45 = vpop.eup %6097 }
 0x148   : > { %v497_v46 = vmul.f32 %v6098_v45, %v495_v44  ;;  %v5913_v45 = vld [vmem:[%s7802_s4 + $0x140] ss:$48 sps:$4 sm:$0xff]  }
 0x14a   : > { %v499_v48 = vsel %vm498_vm1, %v495_v44, %v497_v46  ;;  %v5918_v44 = vld [vmem:[%s7802_s4 + $0x14c] ss:$48 sps:$4 sm:$0xff]   ;;  %v5916_v46 = vld [vmem:[%s7802_s4 + $0x148] ss:$48 sps:$4 sm:$0xff]  }
 0x14b   : > { %v502_v49 = vsel %vm500_vm2, %v501_v47, %v499_v48  ;;  %v5921_v47 = vld [vmem:[%s7802_s4 + $0xe4] ss:$48 sps:$4 sm:$0xff]   ;;  %v5924_v48 = vld [vmem:[%s7802_s4 + $0xec] ss:$48 sps:$4 sm:$0xff]  }
 0x14c   : > { %v503_v50 = vadd.f32 1e-06, %v502_v49  ;;  %v5919_v49 = vld [vmem:[%s7802_s4 + $0xe0] ss:$48 sps:$4 sm:$0xff]  }
 0x14e   : > { %6099 = vrcp.f32 %v503_v50  ;;  %v5922_v50 = vld [vmem:[%s7802_s4 + $0xe8] ss:$48 sps:$4 sm:$0xff]  }
 0x15b   : > { %v6100_v51 = vpop.eup %6099 }
 0x15c   : > { %v505_v53 = vmul.f32 %v6100_v51, %v6328_v6  ;;  %v5861_v6 = vld [vmem:[%s7802_s4 + $0x194] ss:$48 sps:$4 sm:$0xff]  }
 0x15d   : > { %v5927_v51 = vld [vmem:[%s7802_s4 + $0x84] ss:$48 sps:$4 sm:$0xff]  }
 0x15e   : > { %v512_v55 = vmul.f32 %v4949_v52, %v505_v53  ;;  %v5930_v52 = vld [vmem:[%s7802_s4 + $0x8c] ss:$48 sps:$4 sm:$0xff]   ;;  %v5925_v53 = vld [vmem:[%s7802_s4 + $0x80] ss:$48 sps:$4 sm:$0xff]  }
 0x160   : > { %v519_v56 = vadd.f32 %v4950_v54, %v512_v55  ;;  %v5928_v54 = vld [vmem:[%s7802_s4 + $0x88] ss:$48 sps:$4 sm:$0xff]   ;;  %v5933_v55 = vld [vmem:[%s7802_s4 + $0x24] ss:$48 sps:$4 sm:$0xff]  }
 0x162   : > { %v6449_v59 = vpack.c.bf16 %v519_v56, %v519_v56  ;;  %v5936_v56 = vld [vmem:[%s7802_s4 + $0x2c] ss:$48 sps:$4 sm:$0xff]  }
 0x164   : > { %1194 = vmatmul.mubr.bf16.vlgmr.msra.gmra.mxu0 %v6449_v59  ;;  %1235 = vmatmul.mubr.bf16.vlgmr.msra.gmra.mxu1 %v6449_v59 }
 0x165   : > { %1244 = vmatpush1.bf16.msra.mxu0 %v5841_v57  ;;  %1285 = vmatpush1.bf16.msra.mxu1 %v5844_v58  ;;  %v5931_v57 = vld [vmem:[%s7802_s4 + $0x20] ss:$48 sps:$4 sm:$0xff]   ;;  %v5934_v58 = vld [vmem:[%s7802_s4 + $0x28] ss:$48 sps:$4 sm:$0xff]  }
 0x166   : > { %1245 = vmatprep.subr.bf16.mxu0 %v5849_v60  ;;  %1286 = vmatprep.subr.bf16.mxu1 %v5852_v61  ;;  %v6185_v60 = vmov 0.0  }
 0x167   : > { %1275 = vmatprep.mubr.bf16.mxu0 %v6184_v34  ;;  %1316 = vmatprep.mubr.bf16.mxu1 %v6184_v34 }
 0x169   : > { %1246 = vmatpush1.bf16.msra.mxu0 %v5847_v62  ;;  %1287 = vmatpush1.bf16.msra.mxu1 %v5850_v63 }
 0x16a   : > { %1247 = vmatprep.subr.bf16.mxu0 %v5855_v0  ;;  %1288 = vmatprep.subr.bf16.mxu1 %v5858_v3 }
 0x16d   : > { %1248 = vmatpush1.bf16.msra.mxu0 %v5853_v4  ;;  %1289 = vmatpush1.bf16.msra.mxu1 %v5856_v5 }
 0x16e   : > { %1249 = vmatprep.subr.bf16.mxu0 %v5861_v6  ;;  %1290 = vmatprep.subr.bf16.mxu1 %v5864_v7  ;;  %v6652_v6 = vshrl.u32 %v480_v1, 7 }
 0x170   : > { %v6655_v7 = vsub.s32 4, %v6652_v6 }
 0x171   : > { %1250 = vmatpush1.bf16.msra.mxu0 %v5859_v8  ;;  %1291 = vmatpush1.bf16.msra.mxu1 %v5862_v9  ;;  %v6658_v8 = vsub.s32 5, %v6652_v6  ;;  %v6663_v9 = vld [vmem:[%s7803_s5] sm:$0xff] }
 0x172   : > { %1251 = vmatprep.subr.bf16.mxu0 %v5867_v10  ;;  %1292 = vmatprep.subr.bf16.mxu1 %v5870_v11  ;;  %v640_v10 = vrot.slane %v6663_v9, %v6655_v7  ;;  %v6668_v11 = vsub.s32 0, %v6652_v6 }
 0x173   : > { %v644_v1 = vrot.slane %v6663_v9, %v6658_v8 }
 0x175   : > { %1252 = vmatpush1.bf16.msra.mxu0 %v5865_v12  ;;  %1293 = vmatpush1.bf16.msra.mxu1 %v5868_v13  ;;  %v6673_v12 = vsub.s32 1, %v6652_v6 }
 0x176   : > { %1253 = vmatprep.subr.bf16.mxu0 %v5873_v14  ;;  %1294 = vmatprep.subr.bf16.mxu1 %v5876_v15 }
 0x179   : > { %1254 = vmatpush1.bf16.msra.mxu0 %v5871_v16  ;;  %1295 = vmatpush1.bf16.msra.mxu1 %v5874_v17  ;;  %v624_v16 = vrot.slane %v6663_v9, %v6668_v11 }
 0x17a   : > { %1255 = vmatprep.subr.bf16.mxu0 %v5879_v18  ;;  %1296 = vmatprep.subr.bf16.mxu1 %v5882_v19 }
 0x17d   : > { %1256 = vmatpush1.bf16.msra.mxu0 %v5877_v20  ;;  %1297 = vmatpush1.bf16.msra.mxu1 %v5880_v21  ;;  %v628_v21 = vrot.slane %v6663_v9, %v6673_v12 }
 0x17e   : > { %1257 = vmatprep.subr.bf16.mxu0 %v5885_v22  ;;  %1298 = vmatprep.subr.bf16.mxu1 %v5888_v23 }
 0x181   : > { %1258 = vmatpush1.bf16.msra.mxu0 %v5883_v24  ;;  %1299 = vmatpush1.bf16.msra.mxu1 %v5886_v25 }
 0x182   : > { %1325 = vmatprep.subr.bf16.mxu0 %v5891_v26  ;;  %1366 = vmatprep.subr.bf16.mxu1 %v5894_v27 }
 0x184   : > { %1276 = vmatmul.mubr.bf16.vlgmr.msra.gmra.mxu0 %v6449_v59  ;;  %1317 = vmatmul.mubr.bf16.vlgmr.msra.gmra.mxu1 %v6449_v59 }
 0x185   : > { %1326 = vmatpush1.bf16.msra.mxu0 %v5889_v28  ;;  %1367 = vmatpush1.bf16.msra.mxu1 %v5892_v29 }
 0x186   : > { %1327 = vmatprep.subr.bf16.mxu0 %v5897_v30  ;;  %1368 = vmatprep.subr.bf16.mxu1 %v5900_v31  ;;  %v618_v31 = vld [vmem:[%s7803_s5 + $0x8] sm:$0xf] }
 0x187   : > { %1357 = vmatprep.mubr.bf16.mxu0 %v6184_v34  ;;  %1398 = vmatprep.mubr.bf16.mxu1 %v6184_v34 }
 0x189   : > { %1328 = vmatpush1.bf16.msra.mxu0 %v5895_v32  ;;  %1369 = vmatpush1.bf16.msra.mxu1 %v5898_v33  ;;  %v6693_v32 = vsub.s32 2, %v6652_v6  ;;  %v6696_v33 = vsub.s32 3, %v6652_v6 }
 0x18a   : > { %1329 = vmatprep.subr.bf16.mxu0 %v5903_v35  ;;  %1370 = vmatprep.subr.bf16.mxu1 %v5906_v36  ;;  %v656_v35 = vrot.slane %v618_v31, %v6668_v11 }
 0x18b   : > { %v664_v36 = vrot.slane %v618_v31, %v6693_v32 }
 0x18d   : > { %1330 = vmatpush1.bf16.msra.mxu0 %v5901_v37  ;;  %1371 = vmatpush1.bf16.msra.mxu1 %v5904_v38  ;;  %v660_v37 = vrot.slane %v618_v31, %v6673_v12  ;;  %v668_v38 = vrot.slane %v618_v31, %v6696_v33 }
 0x18e   : > { %1331 = vmatprep.subr.bf16.mxu0 %v5909_v39  ;;  %1372 = vmatprep.subr.bf16.mxu1 %v5912_v40 }
 0x191   : > { %1332 = vmatpush1.bf16.msra.mxu0 %v5907_v41  ;;  %1373 = vmatpush1.bf16.msra.mxu1 %v5910_v42 }
 0x192   : > { %1333 = vmatprep.subr.bf16.mxu0 %v5915_v43  ;;  %1374 = vmatprep.subr.bf16.mxu1 %v5918_v44 }
 0x195   : > { %1334 = vmatpush1.bf16.msra.mxu0 %v5913_v45  ;;  %1375 = vmatpush1.bf16.msra.mxu1 %v5916_v46 }
 0x196   : > { %1335 = vmatprep.subr.bf16.mxu0 %v5921_v47  ;;  %1376 = vmatprep.subr.bf16.mxu1 %v5924_v48 }
 0x199   : > { %1336 = vmatpush1.bf16.msra.mxu0 %v5919_v49  ;;  %1377 = vmatpush1.bf16.msra.mxu1 %v5922_v50 }
 0x19a   : > { %1337 = vmatprep.subr.bf16.mxu0 %v5927_v51  ;;  %1378 = vmatprep.subr.bf16.mxu1 %v5930_v52 }
 0x19d   : > { %1338 = vmatpush1.bf16.msra.mxu0 %v5925_v53  ;;  %1379 = vmatpush1.bf16.msra.mxu1 %v5928_v54 }
 0x19e   : > { %1339 = vmatprep.subr.bf16.mxu0 %v5933_v55  ;;  %1380 = vmatprep.subr.bf16.mxu1 %v5936_v56 }
 0x1a1   : > { %1340 = vmatpush1.bf16.msra.mxu0 %v5931_v57  ;;  %1381 = vmatpush1.bf16.msra.mxu1 %v5934_v58 }
 0x1a2   : > { %5623 = vmatprep.subr.bf16.mxu0 %v6185_v60  ;;  %5655 = vmatprep.subr.bf16.mxu1 %v6185_v60 }
 0x1a4   : > { %1358 = vmatmul.mubr.bf16.vlgmr.msra.gmra.mxu0 %v6449_v59  ;;  %1399 = vmatmul.mubr.bf16.vlgmr.msra.gmra.mxu1 %v6449_v59 }
 0x1a5   : > { %5625 = vmatprep.mubr.msk.bf16.mxu0 %vm6186_vm3, %v6185_v60  ;;  %5657 = vmatprep.mubr.msk.bf16.mxu1 %vm6186_vm3, %v6185_v60 }
 0x224   : > { %v1195_v61 = vpop.f32.mrf.mxu0  ;;  %v6647_v62 = vpop.f32.mrf.mxu1 }
 0x225   : > { %v1196_v25 = vadd.f32 %v1195_v61, %v624_v16  ;;  %v479_v61 = vld [vmem:[%s476_s26] sm:$0x1] }
 0x226   : > { %v1197_v63 = vpop.f32.mrf.mxu0  ;;  %v6649_v0 = vpop.f32.mrf.mxu1  ;;  %vm1458_vm5 = vcmp.eq.s32.totalorder %v479_v61, 0  ;;  %v5950_v61 = vld [vmem:[%s7804_s6] sm:$0xff]  }
 0x227   : > { %v1198_v28 = vadd.f32 %v1197_v63, %v628_v21  ;;  %v1415_v29 = vpack.c.bf16 %v1196_v25, %v1196_v25  ;;  %v1459_v63 = vsel %vm1458_vm5, 1, %v6184_v34 }
 0x228   : > { %v1199_v3 = vpop.f32.mrf.mxu0  ;;  %v1240_v59 = vpop.f32.mrf.mxu1 }
 0x229   : > { %v1632_v30 = vpack.c.bf16 %v1198_v28, %v1198_v28  ;;  %v1463_v3 = vrot.slane %v1459_v63, %v6668_v11  ;;  %v5951_v63 = vld [vmem:[%s7804_s6 + $0x48] sm:$0xff]  }
 0x22a   : > { %v1200_v4 = vpop.f32.mrf.mxu0  ;;  %v1241_v5 = vpop.f32.mrf.mxu1 }
 0x22b   : > { %vm6718_vm6 = vcmp.eq.s32.totalorder %v1463_v3, 1  ;;  %v5952_v3 = vld [vmem:[%s7804_s6 + $0x40] sm:$0xff]  }
 0x244   : > { %v1277_v13 = vpop.f32.mrf.mxu0  ;;  %v6675_v14 = vpop.f32.mrf.mxu1 }
 0x245   : > { %v1278_v15 = vadd.f32 %v1277_v13, %v640_v10 }
 0x246   : > { %v1279_v17 = vpop.f32.mrf.mxu0  ;;  %v6679_v18 = vpop.f32.mrf.mxu1 }
 0x247   : > { %v1416_v19 = vpack.c.bf16 %v1278_v15, %v1278_v15  ;;  %v1280_v20 = vadd.f32 %v1279_v17, %v644_v1 }
 0x248   : > { %v1281_v22 = vpop.f32.mrf.mxu0  ;;  %v1322_v23 = vpop.f32.mrf.mxu1 }
 0x249   : > { %v1633_v24 = vpack.c.bf16 %v1280_v20, %v1280_v20  ;;  %5624 = vmatpush3.bf16.xpose.msra.mxu0 %v1416_v19 }
 0x24a   : > { %v1282_v26 = vpop.f32.mrf.mxu0  ;;  %v1323_v27 = vpop.f32.mrf.mxu1  ;;  %5629 = vmatprep.subr.bf16.mxu0 %v6185_v60 }
 0x24b   : > { %5656 = vmatpush3.bf16.xpose.msra.mxu1 %v1633_v24 }
 0x24c   : > { %5661 = vmatprep.subr.bf16.mxu1 %v6185_v60 }
 0x250   : > { %5626 = vmatmul.mubr.bf16.vlgmr.msra.gmra.mxu0 %v1415_v29 }
 0x251   : > { %5631 = vmatprep.mubr.msk.bf16.mxu0 %vm6186_vm3, %v6185_v60 }
 0x252   : > { %5658 = vmatmul.mubr.bf16.vlgmr.msra.gmra.mxu1 %v1632_v30 }
 0x253   : > { %5663 = vmatprep.mubr.msk.bf16.mxu1 %vm6186_vm3, %v6185_v60 }
 0x264   : > { %v1359_v39 = vpop.f32.mrf.mxu0  ;;  %v1400_v40 = vpop.f32.mrf.mxu1 }
 0x265   : > { %v1360_v41 = vadd.f32 %v1359_v39, %v656_v35  ;;  %v1401_v42 = vadd.f32 %v1400_v40, %v664_v36  ;;  %v5937_v40 = vld [vmem:[%s7804_s6 + $0x38] sm:$0xff]  }
 0x266   : > { %v1361_v43 = vpop.f32.mrf.mxu0  ;;  %v1402_v44 = vpop.f32.mrf.mxu1 }
 0x267   : > { %v1417_v45 = vpack.c.bf16 %v1360_v41, %v1360_v41  ;;  %v1843_v46 = vpack.c.bf16 %v1401_v42, %v1401_v42  ;;  %v1362_v47 = vadd.f32 %v1361_v43, %v660_v37  ;;  %v1403_v48 = vadd.f32 %v1402_v44, %v668_v38  ;;  %v5938_v44 = vld [vmem:[%s7804_s6 + $0x30] sm:$0xff]  }
 0x268   : > { %v1363_v49 = vpop.f32.mrf.mxu0  ;;  %v1404_v50 = vpop.f32.mrf.mxu1 }
 0x269   : > { %v1484_v51 = vsel %vm1482_vm4, %v1417_v45, 0  ;;  %v6704_v52 = vsel %vm1482_vm4, %v1843_v46, 0  ;;  %v1634_v53 = vpack.c.bf16 %v1362_v47, %v1362_v47  ;;  %v2052_v54 = vpack.c.bf16 %v1403_v48, %v1403_v48  ;;  %v5939_v45 = vld [vmem:[%s7804_s6 + $0x78] sm:$0xff]   ;;  %v5940_v47 = vld [vmem:[%s7804_s6 + $0x28] sm:$0xff]   ;;  %v5941_v48 = vld [vmem:[%s7804_s6 + $0x70] sm:$0xff]  }
 0x26a   : > { %v1364_v55 = vpop.f32.mrf.mxu0  ;;  %v1405_v56 = vpop.f32.mrf.mxu1  ;;  %5630 = vmatpush3.bf16.msra.mxu0 %v1484_v51  ;;  %v5942_v49 = vld [vmem:[%s7804_s6 + $0x20] sm:$0xff]   ;;  %v5943_v50 = vld [vmem:[%s7804_s6 + $0x68] sm:$0xff]   ;;  %v5944_v51 = vld [vmem:[%s7804_s6 + $0x18] sm:$0xff]  }
 0x26b   : > { %v1692_v57 = vsel %vm1482_vm4, %v1634_v53, 0  ;;  %v6708_v58 = vsel %vm1482_vm4, %v2052_v54, 0  ;;  %5635 = vmatprep.subr.bf16.mxu0 %v6185_v60  ;;  %v5945_v53 = vld [vmem:[%s7804_s6 + $0x60] sm:$0xff]   ;;  %v5946_v54 = vld [vmem:[%s7804_s6 + $0x10] sm:$0xff]   ;;  %v5947_v55 = vld [vmem:[%s7804_s6 + $0x58] sm:$0xff]  }
 0x26c   : > { %5662 = vmatpush3.bf16.msra.mxu1 %v1692_v57  ;;  %v5948_v56 = vld [vmem:[%s7804_s6 + $0x8] sm:$0xff]   ;;  %v5949_v57 = vld [vmem:[%s7804_s6 + $0x50] sm:$0xff]  }
 0x26d   : > { %5667 = vmatprep.subr.bf16.mxu1 %v6185_v60 }
 0x310   : > { %v1452_v4 = vpop.f32.mrf.mxu0 }
 0x311   : > { %v1465_v5 = vsel %vm6718_vm6, -1e+09, %v1452_v4  ;;  %v6801_v4 = vsub.s32 6, %v6652_v6 }
 0x312   : > { %v5627_v10 = vpop.f32.mrf.mxu0  ;;  %v1669_v1 = vpop.f32.mrf.mxu1  ;;  %v1467_v13 = vsel %vm1466_vm7, %v1465_v5, -inf }
 0x313   : > { %v1675_v15 = vsel %vm6718_vm6, -1e+09, %v1669_v1  ;;  %1468 = vmax.xlane.f32.xlu1 %v1467_v13  ;;  %v6806_v10 = vsub.s32 7, %v6652_v6 }
 0x314   : > { %v1455_v16 = vpop.f32.mrf.mxu0  ;;  %v5659_v17 = vpop.f32.mrf.mxu1  ;;  %v1676_v21 = vsel %vm1466_vm7, %v1675_v15, -inf }
 0x315   : > { %v652_v13 = vrot.slane %v6663_v9, %v6806_v10  ;;  %v632_v16 = vrot.slane %v6663_v9, %v6693_v32 }
 0x316   : > { %v5628_v19 = vpop.f32.mrf.mxu0  ;;  %v1672_v20 = vpop.f32.mrf.mxu1 }
 0x317   : > { %1677 = vmax.xlane.f32.xlu1 %v1676_v21  ;;  %v1321_v20 = vadd.f32 %v6679_v18, %v652_v13  ;;  %v1237_v6 = vadd.f32 %v6647_v62, %v632_v16 }
 0x318   : > { %v5660_v22 = vpop.f32.mrf.mxu1 }
 0x39c   : > { %v1469_v23 = vpop.xlane.xlu1 %1468 }
 0x39d   : > { %v1470_v24 = vsub.f32 %v1465_v5, %v1469_v23  ;;  %v648_v5 = vrot.slane %v6663_v9, %v6801_v4 }
 0x39f   : > { %v1471_v25 = vmul.f32 1.442695, %v1470_v24  ;;  %v1319_v1 = vadd.f32 %v6675_v14, %v648_v5  ;;  %v636_v14 = vrot.slane %v6663_v9, %v6696_v33 }
 0x3a0   : > { %v1678_v26 = vpop.xlane.xlu1 %1677 }
 0x3a1   : > { %6101 = vpow2.f32 %v1471_v25  ;;  %v1679_v27 = vsub.f32 %v1675_v15, %v1678_v26  ;;  %v1842_v19 = vpack.c.bf16 %v1319_v1, %v1319_v1  ;;  %v2051_v25 = vpack.c.bf16 %v1321_v20, %v1321_v20 }
 0x3a3   : > { %v1680_v28 = vmul.f32 1.442695, %v1679_v27 }
 0x3a5   : > { %6103 = vpow2.f32 %v1680_v28  ;;  %v1841_v28 = vpack.c.bf16 %v1237_v6, %v1237_v6 }
 0x3ae   : > { %v6102_v29 = vpop.eup %6101 }
 0x3af   : > { %v1473_v30 = vsel %vm1466_vm7, %v6102_v29, 0.0 }
 0x3b0   : > { %1474 = vadd.xlane.f32.xlu0 %v1473_v30  ;;  %v6121_v30 = vld [vmem:[%s6319_s18] sm:$0xff]  ;;  %s467_s18 = sand.u32 1, %s6174_s30  }
 0x3b1   : > { %s4947_s27 = sshll.u32 %s467_s18, 3  ;;  %s4862_s26 = scalar_lea.sflag [#allocation3], %s467_s18 }
 0x3b2   : > { %v6104_v31 = vpop.eup %6103  ;;  %s469_s22 = scalar_lea.vmem [#allocation2], %s4947_s27 }
 0x3b3   : > { %v1682_v35 = vsel %vm1466_vm7, %v6104_v31, 0.0  ;;  %s4875_s19 = sshll.u32 %s469_s22, 4  ;;  %s4876_s19 = int_to_ptr.vmem [resolvable:$true] %s4875_s19 }
 0x3b4   : > { %1683 = vadd.xlane.f32.xlu1 %v1682_v35  ;;  %s6122_s25 = scalar_lea.vmem %s4876_s19, 128  ;;  %p6129_p0 = scmp.lt.s32.totalorder %s4876_s19, %s6127_s28 }
 0x3b5   : > { %p6123_p11 = scmp.ne.s32.totalorder %s4876_s19, %s6122_s25  ;;  %p6130_p1 = scmp.lt.s32.totalorder %s6128_s17, %s6122_s25 }
 0x3b7   : > { %p6124_p12 = pnand %p6123_p11, %p6301_p5  ;;  %p6131_p2 = por %p6130_p1, %p6129_p0 }
 0x3b9   : > { %p6125_p13 = pneg %p6124_p12 }
 0x3bb   : > { %p6132_p3 = pnand %p6131_p2, %p6125_p13 }
 0x439   : > { %v1475_v36 = vpop.xlane.xlu0 %1474 }
 0x43a   : > { %6105 = vrcp.f32 %v1475_v36 }
 0x43d   : > { %v1684_v37 = vpop.xlane.xlu1 %1683 }
 0x43e   : > { %6107 = vrcp.f32 %v1684_v37 }
 0x447   : > { %v6106_v38 = vpop.eup %6105 }
 0x448   : > { %v1477_v39 = vmul.f32 %v6106_v38, %v6102_v29  ;;  %v1239_v29 = vadd.f32 %v6649_v0, %v636_v14  ;;  %v5047_v0 = vld [vmem:[%s7805_s7] ss:$0 sm:$0xff]  ;;  %v5954_v14 = vld [vmem:[%s7804_s6 + $0xb0] sm:$0xff]  }
 0x44a   : > { %v1478_v41 = vpack.c.bf16 %v1477_v39, %v1477_v39  ;;  %v2050_v9 = vpack.c.bf16 %v1239_v29, %v1239_v29  ;;  %v5960_v29 = vld [vmem:[%s7804_s6 + $0x98] sm:$0xff]  }
 0x44b   : > { %v6108_v42 = vpop.eup %6107 }
 0x44c   : > { %5632 = vmatmul.mubr.msk.bf16.vlgmr.msra.gmra.mxu0 %vm1466_vm7, %v1478_v41  ;;  %v1686_v43 = vmul.f32 %v6108_v42, %v6104_v31 }
 0x44d   : > { %5636 = vmatpush3.bf16.msra.mxu0 %v5937_v40  ;;  %5651 = vmatprep.mubr.msk.bf16.mxu0 %vm6186_vm3, %v6185_v60 }
 0x44e   : > { %v1687_v46 = vpack.c.bf16 %v1686_v43, %v1686_v43  ;;  %5637 = vmatprep.subr.bf16.mxu0 %v6185_v60 }
 0x450   : > { %5664 = vmatmul.mubr.msk.bf16.vlgmr.msra.gmra.mxu1 %vm1466_vm7, %v1687_v46 }
 0x451   : > { %5638 = vmatpush3.bf16.msra.mxu0 %v5938_v44  ;;  %5668 = vmatpush3.bf16.msra.mxu1 %v5939_v45 }
 0x452   : > { %5639 = vmatprep.subr.bf16.mxu0 %v6185_v60  ;;  %5669 = vmatprep.subr.bf16.mxu1 %v6185_v60 }
 0x453   : > { %5683 = vmatprep.mubr.msk.bf16.mxu1 %vm6186_vm3, %v6185_v60 }
 0x455   : > { %5640 = vmatpush3.bf16.msra.mxu0 %v5940_v47  ;;  %5670 = vmatpush3.bf16.msra.mxu1 %v5941_v48 }
 0x456   : > { %5641 = vmatprep.subr.bf16.mxu0 %v6185_v60  ;;  %5671 = vmatprep.subr.bf16.mxu1 %v6185_v60 }
 0x459   : > { %5642 = vmatpush3.bf16.msra.mxu0 %v5942_v49  ;;  %5672 = vmatpush3.bf16.msra.mxu1 %v5943_v50 }
 0x45a   : > { %5643 = vmatprep.subr.bf16.mxu0 %v6185_v60  ;;  %5673 = vmatprep.subr.bf16.mxu1 %v6185_v60 }
 0x45d   : > { %5644 = vmatpush3.bf16.msra.mxu0 %v5944_v51  ;;  %5674 = vmatpush3.bf16.msra.mxu1 %v5945_v53 }
 0x45e   : > { %5645 = vmatprep.subr.bf16.mxu0 %v6185_v60  ;;  %5675 = vmatprep.subr.bf16.mxu1 %v6185_v60 }
 0x461   : > { %5646 = vmatpush3.bf16.msra.mxu0 %v5946_v54  ;;  %5676 = vmatpush3.bf16.msra.mxu1 %v5947_v55 }
 0x462   : > { %5647 = vmatprep.subr.bf16.mxu0 %v6185_v60  ;;  %5677 = vmatprep.subr.bf16.mxu1 %v6185_v60 }
 0x465   : > { %5648 = vmatpush3.bf16.msra.mxu0 %v5948_v56  ;;  %5678 = vmatpush3.bf16.msra.mxu1 %v5949_v57 }
 0x466   : > { %5649 = vmatprep.subr.bf16.mxu0 %v6185_v60  ;;  %5679 = vmatprep.subr.bf16.mxu1 %v6185_v60 }
 0x469   : > { %5650 = vmatpush3.bf16.msra.mxu0 %v5950_v61  ;;  %5680 = vmatpush3.bf16.msra.mxu1 %v5951_v63 }
 0x46a   : > { %5681 = vmatprep.subr.bf16.mxu1 %v6185_v60  ;;  %5687 = vmatprep.subr.bf16.mxu0 %v6185_v60 }
 0x46d   : > { %5682 = vmatpush3.bf16.msra.mxu1 %v5952_v3 }
 0x46e   : > { %5719 = vmatprep.subr.bf16.mxu1 %v6185_v60 }
 0x50c   : > { %v1520_v15 = vpop.f32.mrf.mxu0 }
 0x50d   : > { %v1526_v17 = vpack.c.bf16 %v1520_v15, %v1520_v15 }
 0x50e   : > { %v5633_v21 = vpop.f32.mrf.mxu0 }
 0x50f   : > { %5652 = vmatmul.mubr.bf16.vlgmr.msra.gmra.mxu0 %v1526_v17  ;;  %v5953_v21 = vld [vmem:[%s7804_s6 + $0xb8] sm:$0xff]  }
 0x510   : > { %5688 = vmatpush3.bf16.xpose.msra.mxu0 %v1842_v19  ;;  %v1523_v22 = vpop.f32.mrf.mxu0  ;;  %v1728_v23 = vpop.f32.mrf.mxu1  ;;  %5689 = vmatprep.mubr.msk.bf16.mxu0 %vm6186_vm3, %v6185_v60 }
 0x511   : > { %v1734_v24 = vpack.c.bf16 %v1728_v23, %v1728_v23  ;;  %5693 = vmatprep.subr.bf16.mxu0 %v6185_v60 }
 0x512   : > { %v5634_v26 = vpop.f32.mrf.mxu0  ;;  %v5665_v27 = vpop.f32.mrf.mxu1 }
 0x513   : > { %5684 = vmatmul.mubr.bf16.vlgmr.msra.gmra.mxu1 %v1734_v24  ;;  %v5955_v24 = vld [vmem:[%s7804_s6 + $0xf8] sm:$0xff]   ;;  %v5956_v26 = vld [vmem:[%s7804_s6 + $0xa8] sm:$0xff]   ;;  %v5957_v27 = vld [vmem:[%s7804_s6 + $0xf0] sm:$0xff]  }
 0x514   : > { %5720 = vmatpush3.bf16.xpose.msra.mxu1 %v2051_v25  ;;  %v1731_v18 = vpop.f32.mrf.mxu1  ;;  %5721 = vmatprep.mubr.msk.bf16.mxu1 %vm6186_vm3, %v6185_v60 }
 0x515   : > { %5725 = vmatprep.subr.bf16.mxu1 %v6185_v60  ;;  %v5958_v18 = vld [vmem:[%s7804_s6 + $0xa0] sm:$0xff]  }
 0x516   : > { %v5666_v62 = vpop.f32.mrf.mxu1 }
 0x517   : > { %5690 = vmatmul.mubr.bf16.vlgmr.msra.gmra.mxu0 %v1841_v28  ;;  %v5959_v28 = vld [vmem:[%s7804_s6 + $0xe8] sm:$0xff]   ;;  %v5961_v62 = vld [vmem:[%s7804_s6 + $0xe0] sm:$0xff]  }
 0x518   : > { %5694 = vmatpush3.bf16.msra.mxu0 %v6704_v52  ;;  %5695 = vmatprep.mubr.msk.bf16.mxu0 %vm6186_vm3, %v6185_v60  ;;  %v1414_v52 = vadd.f32 %v6121_v30, %v5047_v0  ;;  %v5963_v0 = vld [vmem:[%s7804_s6 + $0xd8] sm:$0xff]   ;;  %v5964_v30 = vld [vmem:[%s7804_s6 + $0x88] sm:$0xff]  }
 0x519   : > { %5699 = vmatprep.subr.bf16.mxu0 %v6185_v60 }
 0x51b   : > { %5722 = vmatmul.mubr.bf16.vlgmr.msra.gmra.mxu1 %v2050_v9  ;;  %v5962_v9 = vld [vmem:[%s7804_s6 + $0x90] sm:$0xff]  }
 0x51c   : > { %5726 = vmatpush3.bf16.msra.mxu1 %v6708_v58  ;;  %5727 = vmatprep.mubr.msk.bf16.mxu1 %vm6186_vm3, %v6185_v60 }
 0x51d   : > { %5731 = vmatprep.subr.bf16.mxu1 %v6185_v60 }
 0x5cf   : > { %v1625_v31 = vpop.f32.mrf.mxu0 }
 0x5d0   : > { %v1631_v36 = vadd.f32 %v1625_v31, %v1414_v52  ;;  %v5965_v52 = vld [vmem:[%s7804_s6 + $0xd0] sm:$0xff]   ;;  %v5966_v31 = vld [vmem:[%s7804_s6 + $0x80] sm:$0xff]  }
 0x5d1   : > { %v5653_v35 = vpop.f32.mrf.mxu0 }
 0x5d2   : > { %v5967_v35 = vld [vmem:[%s7804_s6 + $0xc8] sm:$0xff]  }
 0x5d3   : > { %v1628_v37 = vpop.f32.mrf.mxu0  ;;  %v1834_v38 = vpop.f32.mrf.mxu1 }
 0x5d4   : > { %v6836_v39 = vadd.f32 %v1834_v38, %v1631_v36  ;;  %v5968_v36 = vld [vmem:[%s7804_s6 + $0xc0] sm:$0xff]  }
 0x5d5   : > { %v5654_v40 = vpop.f32.mrf.mxu0  ;;  %v5685_v58 = vpop.f32.mrf.mxu1 }
 0x5d7   : > { %v1837_v41 = vpop.f32.mrf.mxu1  ;;  %v1878_v42 = vpop.f32.mrf.mxu0 }
 0x5d8   : > { %v1884_v43 = vsel %vm6718_vm6, -1e+09, %v1878_v42 }
 0x5d9   : > { %v5686_v44 = vpop.f32.mrf.mxu1  ;;  %v5691_v45 = vpop.f32.mrf.mxu0  ;;  %v1885_v46 = vsel %vm1466_vm7, %v1884_v43, -inf }
 0x5da   : > { %1886 = vmax.xlane.f32.xlu0 %v1885_v46 }
 0x5db   : > { %v1881_v47 = vpop.f32.mrf.mxu0  ;;  %v2087_v48 = vpop.f32.mrf.mxu1 }
 0x5dc   : > { %v2093_v49 = vsel %vm6718_vm6, -1e+09, %v2087_v48 }
 0x5dd   : > { %v5692_v50 = vpop.f32.mrf.mxu0  ;;  %v5723_v51 = vpop.f32.mrf.mxu1  ;;  %v2094_v53 = vsel %vm1466_vm7, %v2093_v49, -inf }
 0x5de   : > { %2095 = vmax.xlane.f32.xlu1 %v2094_v53 }
 0x5df   : > { %v2090_v54 = vpop.f32.mrf.mxu1 }
 0x5e1   : > { %v5724_v55 = vpop.f32.mrf.mxu1 }
 0x663   : > { %v1887_v56 = vpop.xlane.xlu0 %1886 }
 0x664   : > { %v1888_v57 = vsub.f32 %v1884_v43, %v1887_v56 }
 0x666   : > { %v1889_v61 = vmul.f32 1.442695, %v1888_v57 }
 0x667   : > { %v2096_v63 = vpop.xlane.xlu1 %2095 }
 0x668   : > { %6109 = vpow2.f32 %v1889_v61  ;;  %v2097_v3 = vsub.f32 %v2093_v49, %v2096_v63 }
 0x66a   : > { %v2098_v5 = vmul.f32 1.442695, %v2097_v3 }
 0x66c   : > { %6111 = vpow2.f32 %v2098_v5  ;;  %v2407_v5 = vld [vmem:[%s7808_s10 + $0x380] sm:$0xff] }
 0x675   : > { %v6110_v1 = vpop.eup %6109 }
 0x676   : > { %v1891_v13 = vsel %vm1466_vm7, %v6110_v1, 0.0 }
 0x677   : > { %1892 = vadd.xlane.f32.xlu0 %v1891_v13  ;;  %v2408_v13 = vld [vmem:[%s7808_s10 + $0x388] sm:$0xff] }
 0x679   : > { %v6112_v59 = vpop.eup %6111 }
 0x67a   : > { %v2100_v15 = vsel %vm1466_vm7, %v6112_v59, 0.0 }
 0x67b   : > { %2101 = vadd.xlane.f32.xlu1 %v2100_v15 }
 0x700   : > { %v1893_v16 = vpop.xlane.xlu0 %1892 }
 0x701   : > { %6113 = vrcp.f32 %v1893_v16  ;;  %v5248_v16 = vcombine.low %v2408_v13, %v2416_v2 }
 0x704   : > { %v2102_v17 = vpop.xlane.xlu1 %2101 }
 0x705   : > { %6115 = vrcp.f32 %v2102_v17  ;;  %v5249_v17 = vcombine.high %v2408_v13, %v2416_v2  ;;  %v2303_v2 = vld [vmem:[%s7808_s10 + $0x40] sm:$0xff] }
 0x70e   : > { %v6114_v19 = vpop.eup %6113 }
 0x70f   : > { %v1895_v20 = vmul.f32 %v6114_v19, %v6110_v1  ;;  %v2415_v1 = vld [vmem:[%s7808_s10 + $0x3c0] sm:$0xff] }
 0x710   : > { %v5246_v15 = vcombine.low %v2407_v5, %v2415_v1  ;;  %v2391_v19 = vld [vmem:[%s7808_s10 + $0x300] sm:$0xff] }
 0x711   : > { %v1896_v22 = vpack.c.bf16 %v1895_v20, %v1895_v20  ;;  %v2399_v20 = vld [vmem:[%s7808_s10 + $0x340] sm:$0xff] }
 0x712   : > { %v6116_v23 = vpop.eup %6115 }
 0x713   : > { %5696 = vmatmul.mubr.msk.bf16.vlgmr.msra.gmra.mxu0 %vm1466_vm7, %v1896_v22  ;;  %v2104_v6 = vmul.f32 %v6116_v23, %v6112_v59  ;;  %v5247_v59 = vcombine.high %v2407_v5, %v2415_v1  ;;  %v5231_v22 = vcombine.high %v2391_v19, %v2399_v20  ;;  %v2400_v23 = vld [vmem:[%s7808_s10 + $0x348] sm:$0xff] }
 0x714   : > { %5700 = vmatpush3.bf16.msra.mxu0 %v5953_v21  ;;  %5715 = vmatprep.mubr.msk.bf16.mxu0 %vm6186_vm3, %v6185_v60  ;;  %v2392_v21 = vld [vmem:[%s7808_s10 + $0x308] sm:$0xff] }
 0x715   : > { %v2105_v25 = vpack.c.bf16 %v2104_v6, %v2104_v6  ;;  %5701 = vmatprep.subr.bf16.mxu0 %v6185_v60  ;;  %v5230_v6 = vcombine.low %v2391_v19, %v2399_v20  ;;  %v2304_v19 = vld [vmem:[%s7808_s10 + $0x48] sm:$0xff]  ;;  %v2409_v20 = vld [vmem:[%s7808_s10 + $0x390] sm:$0xff] }
 0x717   : > { %5728 = vmatmul.mubr.msk.bf16.vlgmr.msra.gmra.mxu1 %vm1466_vm7, %v2105_v25  ;;  %v2375_v25 = vld [vmem:[%s7808_s10 + $0x280] sm:$0xff] }
 0x718   : > { %5702 = vmatpush3.bf16.msra.mxu0 %v5954_v14  ;;  %5732 = vmatpush3.bf16.msra.mxu1 %v5955_v24  ;;  %v5232_v14 = vcombine.low %v2392_v21, %v2400_v23  ;;  %v5233_v24 = vcombine.high %v2392_v21, %v2400_v23  ;;  %v2417_v21 = vld [vmem:[%s7808_s10 + $0x3d0] sm:$0xff] }
 0x719   : > { %5703 = vmatprep.subr.bf16.mxu0 %v6185_v60  ;;  %5733 = vmatprep.subr.bf16.mxu1 %v6185_v60 }
 0x71a   : > { %5747 = vmatprep.mubr.msk.bf16.mxu1 %vm6186_vm3, %v6185_v60 }
 0x71c   : > { %5704 = vmatpush3.bf16.msra.mxu0 %v5956_v26  ;;  %5734 = vmatpush3.bf16.msra.mxu1 %v5957_v27  ;;  %v2383_v26 = vld [vmem:[%s7808_s10 + $0x2c0] sm:$0xff]  ;;  %v2376_v27 = vld [vmem:[%s7808_s10 + $0x288] sm:$0xff] }
 0x71d   : > { %5705 = vmatprep.subr.bf16.mxu0 %v6185_v60  ;;  %5735 = vmatprep.subr.bf16.mxu1 %v6185_v60 }
 0x720   : > { %5706 = vmatpush3.bf16.msra.mxu0 %v5958_v18  ;;  %5736 = vmatpush3.bf16.msra.mxu1 %v5959_v28  ;;  %v5215_v18 = vcombine.high %v2375_v25, %v2383_v26  ;;  %v2384_v28 = vld [vmem:[%s7808_s10 + $0x2c8] sm:$0xff] }
 0x721   : > { %5707 = vmatprep.subr.bf16.mxu0 %v6185_v60  ;;  %5737 = vmatprep.subr.bf16.mxu1 %v6185_v60 }
 0x724   : > { %5708 = vmatpush3.bf16.msra.mxu0 %v5960_v29  ;;  %5738 = vmatpush3.bf16.msra.mxu1 %v5961_v62  ;;  %v5214_v29 = vcombine.low %v2375_v25, %v2383_v26  ;;  %v5216_v62 = vcombine.low %v2376_v27, %v2384_v28  ;;  %v2418_v25 = vld [vmem:[%s7808_s10 + $0x3d8] sm:$0xff] }
 0x725   : > { %5709 = vmatprep.subr.bf16.mxu0 %v6185_v60  ;;  %5739 = vmatprep.subr.bf16.mxu1 %v6185_v60 }
 0x728   : > { %5710 = vmatpush3.bf16.msra.mxu0 %v5962_v9  ;;  %5740 = vmatpush3.bf16.msra.mxu1 %v5963_v0  ;;  %v5217_v9 = vcombine.high %v2376_v27, %v2384_v28  ;;  %v2359_v0 = vld [vmem:[%s7808_s10 + $0x200] sm:$0xff] }
 0x729   : > { %5711 = vmatprep.subr.bf16.mxu0 %v6185_v60  ;;  %5741 = vmatprep.subr.bf16.mxu1 %v6185_v60 }
 0x72c   : > { %5712 = vmatpush3.bf16.msra.mxu0 %v5964_v30  ;;  %5742 = vmatpush3.bf16.msra.mxu1 %v5965_v52  ;;  %v2367_v30 = vld [vmem:[%s7808_s10 + $0x240] sm:$0xff]  ;;  %v2360_v52 = vld [vmem:[%s7808_s10 + $0x208] sm:$0xff] }
 0x72d   : > { %5713 = vmatprep.subr.bf16.mxu0 %v6185_v60  ;;  %5743 = vmatprep.subr.bf16.mxu1 %v6185_v60 }
 0x730   : > { %5714 = vmatpush3.bf16.msra.mxu0 %v5966_v31  ;;  %5744 = vmatpush3.bf16.msra.mxu1 %v5967_v35  ;;  %v5199_v31 = vcombine.high %v2359_v0, %v2367_v30  ;;  %v2368_v35 = vld [vmem:[%s7808_s10 + $0x248] sm:$0xff] }
 0x731   : > { %5745 = vmatprep.subr.bf16.mxu1 %v6185_v60  ;;  %3147 = vmatprep.subr.bf16.mxu0 %v5247_v59  ;;  %v2295_v59 = vld [vmem:[%s7808_s10] sm:$0xff] }
 0x734   : > { %5746 = vmatpush3.bf16.msra.mxu1 %v5968_v36  ;;  %v5198_v36 = vcombine.low %v2359_v0, %v2367_v30 }
 0x735   : > { %3188 = vmatprep.subr.bf16.mxu1 %v5249_v17  ;;  %v5135_v17 = vcombine.high %v2295_v59, %v2303_v2 }
 0x7d3   : > { %v1937_v37 = vpop.f32.mrf.mxu0 }
 0x7d4   : > { %v1943_v38 = vpack.c.bf16 %v1937_v37, %v1937_v37  ;;  %v5200_v37 = vcombine.low %v2360_v52, %v2368_v35 }
 0x7d5   : > { %v5697_v40 = vpop.f32.mrf.mxu0 }
 0x7d6   : > { %5716 = vmatmul.mubr.bf16.vlgmr.msra.gmra.mxu0 %v1943_v38  ;;  %v5201_v38 = vcombine.high %v2360_v52, %v2368_v35  ;;  %v2343_v40 = vld [vmem:[%s7808_s10 + $0x180] sm:$0xff] }
 0x7d7   : > { %v1940_v58 = vpop.f32.mrf.mxu0  ;;  %v2146_v41 = vpop.f32.mrf.mxu1  ;;  %3179 = vmatprep.mubr.bf16.mxu0 %v6184_v34  ;;  %3148 = vmatpush1.bf16.msra.mxu0 %v5246_v15  ;;  %v2296_v15 = vld [vmem:[%s7808_s10 + $0x8] sm:$0xff]  ;;  %v5132_v35 = vld [vmem:[%s7806_s8] ss:$0 sm:$0xff] }
 0x7d8   : > { %v2152_v42 = vpack.c.bf16 %v2146_v41, %v2146_v41  ;;  %3149 = vmatprep.subr.bf16.mxu0 %v5231_v22  ;;  %v2351_v58 = vld [vmem:[%s7808_s10 + $0x1c0] sm:$0xff]  ;;  %v2344_v41 = vld [vmem:[%s7808_s10 + $0x188] sm:$0xff]  ;;  %v5136_v22 = vcombine.low %v2296_v15, %v2304_v19  ;;  %v5137_v23 = vcombine.high %v2296_v15, %v2304_v19  ;;  %v2354_v15 = vld [vmem:[%s7808_s10 + $0x1d8] sm:$0xff] }
 0x7d9   : > { %v5698_v43 = vpop.f32.mrf.mxu0  ;;  %v5729_v44 = vpop.f32.mrf.mxu1 }
 0x7da   : > { %5748 = vmatmul.mubr.bf16.vlgmr.msra.gmra.mxu1 %v2152_v42  ;;  %v5183_v42 = vcombine.high %v2343_v40, %v2351_v58  ;;  %v2352_v43 = vld [vmem:[%s7808_s10 + $0x1c8] sm:$0xff]  ;;  %v5182_v44 = vcombine.low %v2343_v40, %v2351_v58  ;;  %v2393_v40 = vld [vmem:[%s7808_s10 + $0x310] sm:$0xff] }
 0x7db   : > { %v2149_v45 = vpop.f32.mrf.mxu1  ;;  %3220 = vmatprep.mubr.bf16.mxu1 %v6184_v34  ;;  %3189 = vmatpush1.bf16.msra.mxu1 %v5248_v16  ;;  %v5134_v16 = vcombine.low %v2295_v59, %v2303_v2  ;;  %v2401_v58 = vld [vmem:[%s7808_s10 + $0x350] sm:$0xff]  ;;  %v2346_v2 = vld [vmem:[%s7808_s10 + $0x198] sm:$0xff] }
 0x7dc   : > { %3190 = vmatprep.subr.bf16.mxu1 %v5233_v24  ;;  %3150 = vmatpush1.bf16.msra.mxu0 %v5230_v6  ;;  %v5184_v45 = vcombine.low %v2344_v41, %v2352_v43  ;;  %v5250_v6 = vcombine.low %v2409_v20, %v2417_v21  ;;  %v2410_v24 = vld [vmem:[%s7808_s10 + $0x398] sm:$0xff]  ;;  %v2353_v59 = vld [vmem:[%s7808_s10 + $0x1d0] sm:$0xff] }
 0x7dd   : > { %v5730_v60 = vpop.f32.mrf.mxu1  ;;  %3151 = vmatprep.subr.bf16.mxu0 %v5215_v18  ;;  %v5252_v26 = vcombine.low %v2410_v24, %v2418_v25  ;;  %v5253_v27 = vcombine.high %v2410_v24, %v2418_v25  ;;  %v5188_v24 = vcombine.low %v2346_v2, %v2354_v15 }
 0x7de   : > { %v5185_v60 = vcombine.high %v2344_v41, %v2352_v43  ;;  %v2394_v41 = vld [vmem:[%s7808_s10 + $0x318] sm:$0xff] }
 0x7df   : > { %3191 = vmatpush1.bf16.msra.mxu1 %v5232_v14  ;;  %v5251_v14 = vcombine.high %v2409_v20, %v2417_v21  ;;  %v5189_v20 = vcombine.high %v2346_v2, %v2354_v15  ;;  %v2329_v21 = vld [vmem:[%s7808_s10 + $0x110] sm:$0xff]  ;;  %v2363_v15 = vld [vmem:[%s7808_s10 + $0x220] sm:$0xff] }
 0x7e0   : > { %3192 = vmatprep.subr.bf16.mxu1 %v5217_v9  ;;  %3152 = vmatpush1.bf16.msra.mxu0 %v5214_v29 }
 0x7e1   : > { %3153 = vmatprep.subr.bf16.mxu0 %v5199_v31 }
 0x7e3   : > { %3193 = vmatpush1.bf16.msra.mxu1 %v5216_v62 }
 0x7e4   : > { %3194 = vmatprep.subr.bf16.mxu1 %v5201_v38  ;;  %3154 = vmatpush1.bf16.msra.mxu0 %v5198_v36 }
 0x7e5   : > { %3155 = vmatprep.subr.bf16.mxu0 %v5183_v42 }
 0x7e7   : > { %3195 = vmatpush1.bf16.msra.mxu1 %v5200_v37  ;;  %v5133_v37 = vld [vmem:[%s7807_s9] ss:$0 sm:$0xff] }
 0x7e8   : > { %3196 = vmatprep.subr.bf16.mxu1 %v5185_v60  ;;  %3156 = vmatpush1.bf16.msra.mxu0 %v5182_v44  ;;  %v5235_v44 = vcombine.high %v2393_v40, %v2401_v58  ;;  %v2377_v60 = vld [vmem:[%s7808_s10 + $0x290] sm:$0xff] }
 0x7eb   : > { %3197 = vmatpush1.bf16.msra.mxu1 %v5184_v45 }
 0x896   : > { %v2043_v46 = vpop.f32.mrf.mxu0 }
 0x897   : > { %v2049_v48 = vadd.f32 %v2043_v46, %v6836_v39  ;;  %v2327_v46 = vld [vmem:[%s7808_s10 + $0x100] sm:$0xff] }
 0x898   : > { %v5717_v47 = vpop.f32.mrf.mxu0 }
 0x899   : > { %v2335_v47 = vld [vmem:[%s7808_s10 + $0x140] sm:$0xff] }
 0x89a   : > { %v2046_v49 = vpop.f32.mrf.mxu0  ;;  %v2252_v50 = vpop.f32.mrf.mxu1 }
 0x89b   : > { %v6917_v51 = vadd.f32 %v2252_v50, %v2049_v48  ;;  %v2328_v48 = vld [vmem:[%s7808_s10 + $0x108] sm:$0xff]  ;;  %v5167_v49 = vcombine.high %v2327_v46, %v2335_v47 }
 0x89c   : > { %v5718_v53 = vpop.f32.mrf.mxu0  ;;  %v5749_v54 = vpop.f32.mrf.mxu1  ;;  %v2336_v50 = vld [vmem:[%s7808_s10 + $0x148] sm:$0xff] }
 0x89d   : > { %2261 = vadd.xlane.f32.xlu0 %v6917_v51  ;;  %v5166_v53 = vcombine.low %v2327_v46, %v2335_v47  ;;  %v5168_v54 = vcombine.low %v2328_v48, %v2336_v50  ;;  %3157 = vmatprep.subr.bf16.mxu0 %v5167_v49  ;;  %v2385_v46 = vld [vmem:[%s7808_s10 + $0x2d0] sm:$0xff]  ;;  %v2378_v47 = vld [vmem:[%s7808_s10 + $0x298] sm:$0xff]  ;;  %v5234_v49 = vcombine.low %v2393_v40, %v2401_v58 }
 0x89e   : > { %v2255_v55 = vpop.f32.mrf.mxu1 }
 0x89f   : > { %v5169_v55 = vcombine.high %v2328_v48, %v2336_v50  ;;  %3158 = vmatpush1.bf16.msra.mxu0 %v5166_v53  ;;  %v2386_v48 = vld [vmem:[%s7808_s10 + $0x2d8] sm:$0xff]  ;;  %v5219_v53 = vcombine.high %v2377_v60, %v2385_v46 }
 0x8a0   : > { %v5750_v56 = vpop.f32.mrf.mxu1 }
 0x8a1   : > { %3198 = vmatprep.subr.bf16.mxu1 %v5169_v55  ;;  %v2311_v56 = vld [vmem:[%s7808_s10 + $0x80] sm:$0xff]  ;;  %v2361_v55 = vld [vmem:[%s7808_s10 + $0x210] sm:$0xff] }
 0x8a2   : > { %3199 = vmatpush1.bf16.msra.mxu1 %v5168_v54  ;;  %v5221_v54 = vcombine.high %v2378_v47, %v2386_v48 }
 0x926   : > { %v2262_v57 = vpop.xlane.xlu0 %2261 }
 0x927   : > { %v2263_v61 = vmul.f32 0.03125, %v2262_v57  ;;  %v2319_v57 = vld [vmem:[%s7808_s10 + $0xc0] sm:$0xff] }
 0x928   : > { %v5150_v5 = vcombine.low %v2311_v56, %v2319_v57 }
 0x929   : > { %v2264_v63 = vsub.f32 %v6917_v51, %v2263_v61  ;;  %v2312_v61 = vld [vmem:[%s7808_s10 + $0x88] sm:$0xff] }
 0x92b   : > { %v6923_v3 = vsel %vm482_vm0, %v2264_v63, 0.0  ;;  %v5151_v63 = vcombine.high %v2311_v56, %v2319_v57  ;;  %v2369_v56 = vld [vmem:[%s7808_s10 + $0x250] sm:$0xff]  ;;  %v2362_v57 = vld [vmem:[%s7808_s10 + $0x218] sm:$0xff] }
 0x92c   : > { %v2266_v39 = vmul.f32 %v6923_v3, %v6923_v3 }
 0x92d   : > { %3159 = vmatprep.subr.bf16.mxu0 %v5151_v63  ;;  %v5218_v63 = vcombine.low %v2377_v60, %v2385_v46 }
 0x92e   : > { %2267 = vadd.xlane.f32.xlu1 %v2266_v39  ;;  %v2320_v39 = vld [vmem:[%s7808_s10 + $0xc8] sm:$0xff]  ;;  %3160 = vmatpush1.bf16.msra.mxu0 %v5150_v5  ;;  %v5203_v5 = vcombine.high %v2361_v55, %v2369_v56 }
 0x92f   : > { %v5152_v1 = vcombine.low %v2312_v61, %v2320_v39  ;;  %v5153_v13 = vcombine.high %v2312_v61, %v2320_v39  ;;  %3161 = vmatprep.subr.bf16.mxu0 %v5135_v17  ;;  %v2370_v61 = vld [vmem:[%s7808_s10 + $0x258] sm:$0xff]  ;;  %v5220_v39 = vcombine.low %v2378_v47, %v2386_v48  ;;  %v2395_v48 = vld [vmem:[%s7808_s10 + $0x320] sm:$0xff] }
 0x930   : > { %v5204_v17 = vcombine.low %v2362_v57, %v2370_v61 }
 0x931   : > { %3200 = vmatprep.subr.bf16.mxu1 %v5153_v13  ;;  %v2345_v13 = vld [vmem:[%s7808_s10 + $0x190] sm:$0xff] }
 0x932   : > { %3201 = vmatpush1.bf16.msra.mxu1 %v5152_v1  ;;  %3162 = vmatpush1.bf16.msra.mxu0 %v5134_v16  ;;  %v5205_v1 = vcombine.high %v2362_v57, %v2370_v61  ;;  %v5202_v16 = vcombine.low %v2361_v55, %v2369_v56  ;;  %v5187_v19 = vcombine.high %v2345_v13, %v2353_v59  ;;  %v2379_v61 = vld [vmem:[%s7808_s10 + $0x2a0] sm:$0xff] }
 0x933   : > { %3202 = vmatprep.subr.bf16.mxu1 %v5137_v23  ;;  %3229 = vmatprep.subr.bf16.mxu0 %v5251_v14  ;;  %v2330_v23 = vld [vmem:[%s7808_s10 + $0x118] sm:$0xff]  ;;  %v5186_v14 = vcombine.low %v2345_v13, %v2353_v59 }
 0x936   : > { %3203 = vmatpush1.bf16.msra.mxu1 %v5136_v22  ;;  %v2337_v22 = vld [vmem:[%s7808_s10 + $0x150] sm:$0xff] }
 0x937   : > { %3270 = vmatprep.subr.bf16.mxu1 %v5253_v27  ;;  %v5171_v25 = vcombine.high %v2329_v21, %v2337_v22  ;;  %v2313_v27 = vld [vmem:[%s7808_s10 + $0x90] sm:$0xff] }
 0x9b7   : > { %v2268_v18 = vpop.xlane.xlu1 %2267 }
 0x9b8   : > { %v2269_v28 = vmul.f32 0.032258064, %v2268_v18  ;;  %v2321_v18 = vld [vmem:[%s7808_s10 + $0xd0] sm:$0xff] }
 0x9ba   : > { %6117 = vrsqrt.f32 %v2269_v28  ;;  %vm2272_vm8 = vcmp.eq.f32.partialorder %v2269_v28, inf  ;;  %v2275_v9 = vand.u32 2147483648, %v2269_v28  ;;  %vm2274_vm9 = vcmp.eq.f32.partialorder %v2269_v28, 0.0 }
 0x9c7   : > { %v6118_v29 = vpop.eup %6117 }
 0x9c8   : > { %v2271_v62 = vmul.f32 %v6118_v29, %v2269_v28  ;;  %v2322_v29 = vld [vmem:[%s7808_s10 + $0xd8] sm:$0xff] }
 0x9ca   : > { %v2273_v0 = vsel %vm2272_vm8, %v2269_v28, %v2271_v62  ;;  %v2314_v28 = vld [vmem:[%s7808_s10 + $0x98] sm:$0xff]  ;;  %v5170_v62 = vcombine.low %v2329_v21, %v2337_v22 }
 0x9cb   : > { %v2276_v30 = vsel %vm2274_vm9, %v2275_v9, %v2273_v0  ;;  %v5155_v0 = vcombine.high %v2313_v27, %v2321_v18 }
 0x9cc   : > { %v2277_v52 = vadd.f32 1e-06, %v2276_v30  ;;  %v5157_v30 = vcombine.high %v2314_v28, %v2322_v29 }
 0x9ce   : > { %6119 = vrcp.f32 %v2277_v52  ;;  %v2297_v52 = vld [vmem:[%s7808_s10 + $0x10] sm:$0xff] }
 0x9db   : > { %v6120_v31 = vpop.eup %6119 }
 0x9dc   : > { %v2279_v36 = vmul.f32 %v6120_v31, %v6923_v3  ;;  %v2402_v3 = vld [vmem:[%s7808_s10 + $0x358] sm:$0xff]  ;;  %v2305_v31 = vld [vmem:[%s7808_s10 + $0x50] sm:$0xff] }
 0x9dd   : > { %v5237_v45 = vcombine.high %v2394_v41, %v2402_v3  ;;  %v5236_v50 = vcombine.low %v2394_v41, %v2402_v3  ;;  %v5139_v40 = vcombine.high %v2297_v52, %v2305_v31  ;;  %v2411_v41 = vld [vmem:[%s7808_s10 + $0x3a0] sm:$0xff] }
 0x9de   : > { %v2286_v38 = vmul.f32 %v5132_v35, %v2279_v36  ;;  %v2298_v35 = vld [vmem:[%s7808_s10 + $0x18] sm:$0xff]  ;;  %v2419_v3 = vld [vmem:[%s7808_s10 + $0x3e0] sm:$0xff] }
 0x9df   : > { %v2306_v36 = vld [vmem:[%s7808_s10 + $0x58] sm:$0xff]  ;;  %v5255_v46 = vcombine.high %v2411_v41, %v2419_v3 }
 0x9e0   : > { %v2293_v42 = vadd.f32 %v5133_v37, %v2286_v38  ;;  %v5154_v37 = vcombine.low %v2313_v27, %v2321_v18  ;;  %v5156_v38 = vcombine.low %v2314_v28, %v2322_v29  ;;  %v5141_v58 = vcombine.high %v2298_v35, %v2306_v36  ;;  %v2331_v29 = vld [vmem:[%s7808_s10 + $0x120] sm:$0xff] }
 0x9e1   : > { %v5140_v60 = vcombine.low %v2298_v35, %v2306_v36  ;;  %v2315_v36 = vld [vmem:[%s7808_s10 + $0xa0] sm:$0xff] }
 0x9e2   : > { %v7054_v43 = vpack.c.bf16 %v2293_v42, %v2293_v42  ;;  %v2412_v42 = vld [vmem:[%s7808_s10 + $0x3a8] sm:$0xff] }
 0x9e4   : > { %3180 = vmatmul.mubr.bf16.vlgmr.msra.gmra.mxu0 %v7054_v43  ;;  %3221 = vmatmul.mubr.bf16.vlgmr.msra.gmra.mxu1 %v7054_v43 }
 0x9e5   : > { %3230 = vmatpush1.bf16.msra.mxu0 %v5250_v6  ;;  %3271 = vmatpush1.bf16.msra.mxu1 %v5252_v26  ;;  %v2338_v6 = vld [vmem:[%s7808_s10 + $0x158] sm:$0xff] }
 0x9e6   : > { %3231 = vmatprep.subr.bf16.mxu0 %v5235_v44  ;;  %3272 = vmatprep.subr.bf16.mxu1 %v5237_v45  ;;  %v5173_v26 = vcombine.high %v2330_v23, %v2338_v6  ;;  %v5172_v9 = vcombine.low %v2330_v23, %v2338_v6  ;;  %v2420_v44 = vld [vmem:[%s7808_s10 + $0x3e8] sm:$0xff]  ;;  %v5138_v45 = vcombine.low %v2297_v52, %v2305_v31  ;;  %v2347_v6 = vld [vmem:[%s7808_s10 + $0x1a0] sm:$0xff] }
 0x9e7   : > { %3261 = vmatprep.mubr.bf16.mxu0 %v6184_v34  ;;  %3302 = vmatprep.mubr.bf16.mxu1 %v6184_v34  ;;  %v5257_v47 = vcombine.high %v2412_v42, %v2420_v44  ;;  %v5256_v55 = vcombine.low %v2412_v42, %v2420_v44  ;;  %v2299_v44 = vld [vmem:[%s7808_s10 + $0x20] sm:$0xff] }
 0x9e9   : > { %3232 = vmatpush1.bf16.msra.mxu0 %v5234_v49  ;;  %3273 = vmatpush1.bf16.msra.mxu1 %v5236_v50  ;;  %v2403_v49 = vld [vmem:[%s7808_s10 + $0x360] sm:$0xff]  ;;  %v2396_v50 = vld [vmem:[%s7808_s10 + $0x328] sm:$0xff] }
 0x9ea   : > { %3233 = vmatprep.subr.bf16.mxu0 %v5219_v53  ;;  %3274 = vmatprep.subr.bf16.mxu1 %v5221_v54  ;;  %v2404_v53 = vld [vmem:[%s7808_s10 + $0x368] sm:$0xff]  ;;  %v5254_v54 = vcombine.low %v2411_v41, %v2419_v3  ;;  %v5239_v56 = vcombine.high %v2395_v48, %v2403_v49 }
 0x9eb   : > { %v5241_v57 = vcombine.high %v2396_v50, %v2404_v53  ;;  %v5240_v13 = vcombine.low %v2396_v50, %v2404_v53  ;;  %v2413_v53 = vld [vmem:[%s7808_s10 + $0x3b0] sm:$0xff] }
 0x9ed   : > { %3234 = vmatpush1.bf16.msra.mxu0 %v5218_v63  ;;  %3275 = vmatpush1.bf16.msra.mxu1 %v5220_v39  ;;  %v2387_v63 = vld [vmem:[%s7808_s10 + $0x2e0] sm:$0xff]  ;;  %v2380_v39 = vld [vmem:[%s7808_s10 + $0x2a8] sm:$0xff] }
 0x9ee   : > { %3235 = vmatprep.subr.bf16.mxu0 %v5203_v5  ;;  %3276 = vmatprep.subr.bf16.mxu1 %v5205_v1  ;;  %v2388_v5 = vld [vmem:[%s7808_s10 + $0x2e8] sm:$0xff]  ;;  %v5238_v1 = vcombine.low %v2395_v48, %v2403_v49  ;;  %v5223_v59 = vcombine.high %v2379_v61, %v2387_v63 }
 0x9ef   : > { %v5225_v2 = vcombine.high %v2380_v39, %v2388_v5  ;;  %v5224_v21 = vcombine.low %v2380_v39, %v2388_v5  ;;  %v2397_v5 = vld [vmem:[%s7808_s10 + $0x330] sm:$0xff] }
 0x9f1   : > { %3236 = vmatpush1.bf16.msra.mxu0 %v5202_v16  ;;  %3277 = vmatpush1.bf16.msra.mxu1 %v5204_v17  ;;  %v2371_v16 = vld [vmem:[%s7808_s10 + $0x260] sm:$0xff]  ;;  %v2364_v17 = vld [vmem:[%s7808_s10 + $0x228] sm:$0xff] }
 0x9f2   : > { %3237 = vmatprep.subr.bf16.mxu0 %v5187_v19  ;;  %3278 = vmatprep.subr.bf16.mxu1 %v5189_v20  ;;  %v2372_v19 = vld [vmem:[%s7808_s10 + $0x268] sm:$0xff]  ;;  %v5222_v20 = vcombine.low %v2379_v61, %v2387_v63  ;;  %v5207_v22 = vcombine.high %v2363_v15, %v2371_v16 }
 0x9f3   : > { %v5209_v23 = vcombine.high %v2364_v17, %v2372_v19  ;;  %v5208_v27 = vcombine.low %v2364_v17, %v2372_v19  ;;  %v2381_v19 = vld [vmem:[%s7808_s10 + $0x2b0] sm:$0xff] }
 0x9f5   : > { %3238 = vmatpush1.bf16.msra.mxu0 %v5186_v14  ;;  %3279 = vmatpush1.bf16.msra.mxu1 %v5188_v24  ;;  %v2355_v14 = vld [vmem:[%s7808_s10 + $0x1e0] sm:$0xff]  ;;  %v2348_v24 = vld [vmem:[%s7808_s10 + $0x1a8] sm:$0xff] }
 0x9f6   : > { %3239 = vmatprep.subr.bf16.mxu0 %v5171_v25  ;;  %3280 = vmatprep.subr.bf16.mxu1 %v5173_v26  ;;  %v2356_v25 = vld [vmem:[%s7808_s10 + $0x1e8] sm:$0xff]  ;;  %v5206_v26 = vcombine.low %v2363_v15, %v2371_v16  ;;  %v5191_v18 = vcombine.high %v2347_v6, %v2355_v14 }
 0x9f7   : > { %v5193_v28 = vcombine.high %v2348_v24, %v2356_v25  ;;  %v5192_v52 = vcombine.low %v2348_v24, %v2356_v25  ;;  %v2365_v25 = vld [vmem:[%s7808_s10 + $0x230] sm:$0xff] }
 0x9f9   : > { %3240 = vmatpush1.bf16.msra.mxu0 %v5170_v62  ;;  %3281 = vmatpush1.bf16.msra.mxu1 %v5172_v9  ;;  %v2339_v62 = vld [vmem:[%s7808_s10 + $0x160] sm:$0xff]  ;;  %v2332_v9 = vld [vmem:[%s7808_s10 + $0x128] sm:$0xff] }
 0x9fa   : > { %3241 = vmatprep.subr.bf16.mxu0 %v5155_v0  ;;  %3282 = vmatprep.subr.bf16.mxu1 %v5157_v30  ;;  %v2340_v0 = vld [vmem:[%s7808_s10 + $0x168] sm:$0xff]  ;;  %v5190_v30 = vcombine.low %v2347_v6, %v2355_v14  ;;  %v5175_v31 = vcombine.high %v2331_v29, %v2339_v62 }
 0x9fb   : > { %v5177_v35 = vcombine.high %v2332_v9, %v2340_v0  ;;  %v5176_v41 = vcombine.low %v2332_v9, %v2340_v0  ;;  %v2349_v0 = vld [vmem:[%s7808_s10 + $0x1b0] sm:$0xff] }
 0x9fd   : > { %3242 = vmatpush1.bf16.msra.mxu0 %v5154_v37  ;;  %3283 = vmatpush1.bf16.msra.mxu1 %v5156_v38  ;;  %v2323_v37 = vld [vmem:[%s7808_s10 + $0xe0] sm:$0xff]  ;;  %v2316_v38 = vld [vmem:[%s7808_s10 + $0xa8] sm:$0xff] }
 0x9fe   : > { %3243 = vmatprep.subr.bf16.mxu0 %v5139_v40  ;;  %3284 = vmatprep.subr.bf16.mxu1 %v5141_v58  ;;  %v2324_v40 = vld [vmem:[%s7808_s10 + $0xe8] sm:$0xff]  ;;  %v5174_v58 = vcombine.low %v2331_v29, %v2339_v62  ;;  %v5159_v3 = vcombine.high %v2315_v36, %v2323_v37 }
 0x9ff   : > { %v5161_v42 = vcombine.high %v2316_v38, %v2324_v40  ;;  %v5160_v48 = vcombine.low %v2316_v38, %v2324_v40  ;;  %v2333_v38 = vld [vmem:[%s7808_s10 + $0x130] sm:$0xff] }
 0xa00   : > { %v2341_v40 = vld [vmem:[%s7808_s10 + $0x170] sm:$0xff] }
 0xa01   : > { %3244 = vmatpush1.bf16.msra.mxu0 %v5138_v45  ;;  %3285 = vmatpush1.bf16.msra.mxu1 %v5140_v60  ;;  %v2307_v45 = vld [vmem:[%s7808_s10 + $0x60] sm:$0xff]  ;;  %v2300_v60 = vld [vmem:[%s7808_s10 + $0x28] sm:$0xff] }
 0xa02   : > { %3311 = vmatprep.subr.bf16.mxu0 %v5255_v46  ;;  %3352 = vmatprep.subr.bf16.mxu1 %v5257_v47  ;;  %v2308_v46 = vld [vmem:[%s7808_s10 + $0x68] sm:$0xff]  ;;  %v5158_v47 = vcombine.low %v2315_v36, %v2323_v37  ;;  %v5143_v49 = vcombine.high %v2299_v44, %v2307_v45 }
 0xa03   : > { %v5145_v50 = vcombine.high %v2300_v60, %v2308_v46  ;;  %v5144_v61 = vcombine.low %v2300_v60, %v2308_v46  ;;  %v2317_v60 = vld [vmem:[%s7808_s10 + $0xb0] sm:$0xff] }
 0xa04   : > { %3262 = vmatmul.mubr.bf16.vlgmr.msra.gmra.mxu0 %v7054_v43  ;;  %3303 = vmatmul.mubr.bf16.vlgmr.msra.gmra.mxu1 %v7054_v43  ;;  %v2325_v46 = vld [vmem:[%s7808_s10 + $0xf0] sm:$0xff] }
 0xa05   : > { %3312 = vmatpush1.bf16.msra.mxu0 %v5254_v54  ;;  %3353 = vmatpush1.bf16.msra.mxu1 %v5256_v55  ;;  %v2421_v54 = vld [vmem:[%s7808_s10 + $0x3f0] sm:$0xff]  ;;  %v2414_v55 = vld [vmem:[%s7808_s10 + $0x3b8] sm:$0xff] }
 0xa06   : > { %3313 = vmatprep.subr.bf16.mxu0 %v5239_v56  ;;  %3354 = vmatprep.subr.bf16.mxu1 %v5241_v57  ;;  %v2422_v56 = vld [vmem:[%s7808_s10 + $0x3f8] sm:$0xff]  ;;  %v5142_v57 = vcombine.low %v2299_v44, %v2307_v45  ;;  %v5259_v63 = vcombine.high %v2413_v53, %v2421_v54  ;;  %v5179_v44 = vcombine.high %v2333_v38, %v2341_v40 }
 0xa07   : > { %3343 = vmatprep.mubr.bf16.mxu0 %v6184_v34  ;;  %3384 = vmatprep.mubr.bf16.mxu1 %v6184_v34  ;;  %v5261_v39 = vcombine.high %v2414_v55, %v2422_v56  ;;  %v5260_v15 = vcombine.low %v2414_v55, %v2422_v56  ;;  %v2301_v55 = vld [vmem:[%s7808_s10 + $0x30] sm:$0xff] }
 0xa08   : > { %v2309_v56 = vld [vmem:[%s7808_s10 + $0x70] sm:$0xff] }
 0xa09   : > { %3314 = vmatpush1.bf16.msra.mxu0 %v5238_v1  ;;  %3355 = vmatpush1.bf16.msra.mxu1 %v5240_v13  ;;  %v2405_v1 = vld [vmem:[%s7808_s10 + $0x370] sm:$0xff]  ;;  %v2398_v13 = vld [vmem:[%s7808_s10 + $0x338] sm:$0xff] }
 0xa0a   : > { %3315 = vmatprep.subr.bf16.mxu0 %v5223_v59  ;;  %3356 = vmatprep.subr.bf16.mxu1 %v5225_v2  ;;  %v2406_v59 = vld [vmem:[%s7808_s10 + $0x378] sm:$0xff]  ;;  %v5258_v2 = vcombine.low %v2413_v53, %v2421_v54  ;;  %v5243_v16 = vcombine.high %v2397_v5, %v2405_v1  ;;  %v5163_v53 = vcombine.high %v2317_v60, %v2325_v46 }
 0xa0b   : > { %v5245_v17 = vcombine.high %v2398_v13, %v2406_v59  ;;  %v5244_v6 = vcombine.low %v2398_v13, %v2406_v59  ;;  %v5146_v13 = vcombine.low %v2301_v55, %v2309_v56 }
 0xa0d   : > { %3316 = vmatpush1.bf16.msra.mxu0 %v5222_v20  ;;  %3357 = vmatpush1.bf16.msra.mxu1 %v5224_v21  ;;  %v2389_v20 = vld [vmem:[%s7808_s10 + $0x2f0] sm:$0xff]  ;;  %v2382_v21 = vld [vmem:[%s7808_s10 + $0x2b8] sm:$0xff] }
 0xa0e   : > { %3317 = vmatprep.subr.bf16.mxu0 %v5207_v22  ;;  %3358 = vmatprep.subr.bf16.mxu1 %v5209_v23  ;;  %v2390_v22 = vld [vmem:[%s7808_s10 + $0x2f8] sm:$0xff]  ;;  %v5242_v23 = vcombine.low %v2397_v5, %v2405_v1  ;;  %v5227_v14 = vcombine.high %v2381_v19, %v2389_v20  ;;  %v5147_v5 = vcombine.high %v2301_v55, %v2309_v56 }
 0xa0f   : > { %v5229_v24 = vcombine.high %v2382_v21, %v2390_v22  ;;  %v5228_v29 = vcombine.low %v2382_v21, %v2390_v22  ;;  %v5975_v21 = vld [vmem:[%s7810_s12 + $0x30] sm:$0xff]  }
 0xa10   : > { %v5976_v22 = vld [vmem:[%s7810_s12 + $0xb0] sm:$0xff]  }
 0xa11   : > { %3318 = vmatpush1.bf16.msra.mxu0 %v5206_v26  ;;  %3359 = vmatpush1.bf16.msra.mxu1 %v5208_v27  ;;  %v2373_v26 = vld [vmem:[%s7808_s10 + $0x270] sm:$0xff]  ;;  %v2366_v27 = vld [vmem:[%s7808_s10 + $0x238] sm:$0xff] }
 0xa12   : > { %3319 = vmatprep.subr.bf16.mxu0 %v5191_v18  ;;  %3360 = vmatprep.subr.bf16.mxu1 %v5193_v28  ;;  %v2374_v18 = vld [vmem:[%s7808_s10 + $0x278] sm:$0xff]  ;;  %v5226_v28 = vcombine.low %v2381_v19, %v2389_v20  ;;  %v5211_v62 = vcombine.high %v2365_v25, %v2373_v26  ;;  %v5973_v19 = vld [vmem:[%s7810_s12 + $0x70] sm:$0xff]  }
 0xa13   : > { %v5213_v9 = vcombine.high %v2366_v27, %v2374_v18  ;;  %v5974_v20 = vld [vmem:[%s7810_s12 + $0xf0] sm:$0xff]  }
 0xa15   : > { %3320 = vmatpush1.bf16.msra.mxu0 %v5190_v30  ;;  %3361 = vmatpush1.bf16.msra.mxu1 %v5192_v52  ;;  %v2357_v30 = vld [vmem:[%s7808_s10 + $0x1f0] sm:$0xff]  ;;  %v2358_v52 = vld [vmem:[%s7808_s10 + $0x1f8] sm:$0xff] }
 0xa16   : > { %3321 = vmatprep.subr.bf16.mxu0 %v5175_v31  ;;  %3362 = vmatprep.subr.bf16.mxu1 %v5177_v35  ;;  %v5210_v31 = vcombine.low %v2365_v25, %v2373_v26  ;;  %v5212_v35 = vcombine.low %v2366_v27, %v2374_v18  ;;  %v5195_v36 = vcombine.high %v2349_v0, %v2357_v30  ;;  %v5982_v25 = vld [vmem:[%s7810_s12 + $0xe0] sm:$0xff]   ;;  %v5985_v18 = vld [vmem:[%s7810_s12 + $0x58] sm:$0xff]  }
 0xa17   : > { %v5983_v26 = vld [vmem:[%s7810_s12 + $0x20] sm:$0xff]  }
 0xa18   : > { %v5984_v27 = vld [vmem:[%s7810_s12 + $0xa0] sm:$0xff]  }
 0xa19   : > { %3322 = vmatpush1.bf16.msra.mxu0 %v5174_v58  ;;  %3363 = vmatpush1.bf16.msra.mxu1 %v5176_v41  ;;  %v2334_v58 = vld [vmem:[%s7808_s10 + $0x138] sm:$0xff] }
 0xa1a   : > { %3323 = vmatprep.subr.bf16.mxu0 %v5159_v3  ;;  %3364 = vmatprep.subr.bf16.mxu1 %v5161_v42  ;;  %v2342_v41 = vld [vmem:[%s7808_s10 + $0x178] sm:$0xff]  ;;  %v5194_v3 = vcombine.low %v2349_v0, %v2357_v30  ;;  %v5990_v0 = vld [vmem:[%s7810_s12 + $0xd0] sm:$0xff]  }
 0xa1b   : > { %v5181_v45 = vcombine.high %v2334_v58, %v2342_v41  ;;  %v5991_v30 = vld [vmem:[%s7810_s12 + $0x10] sm:$0xff]  }
 0xa1d   : > { %3324 = vmatpush1.bf16.msra.mxu0 %v5158_v47  ;;  %3365 = vmatpush1.bf16.msra.mxu1 %v5160_v48  ;;  %v2318_v47 = vld [vmem:[%s7808_s10 + $0xb8] sm:$0xff] }
 0xa1e   : > { %3325 = vmatprep.subr.bf16.mxu0 %v5143_v49  ;;  %3366 = vmatprep.subr.bf16.mxu1 %v5145_v50  ;;  %v2326_v48 = vld [vmem:[%s7808_s10 + $0xf8] sm:$0xff]  ;;  %v5178_v49 = vcombine.low %v2333_v38, %v2341_v40  ;;  %v5180_v50 = vcombine.low %v2334_v58, %v2342_v41  ;;  %v5998_v38 = vld [vmem:[%s7810_s12 + $0xc0] sm:$0xff]  }
 0xa1f   : > { %v5165_v54 = vcombine.high %v2318_v47, %v2326_v48  ;;  %v5999_v40 = vld [vmem:[%s7810_s12] sm:$0xff]   ;;  %v6001_v41 = vld [vmem:[%s7810_s12 + $0x178] sm:$0xff]  }
 0xa20   : > { %v6000_v58 = vld [vmem:[%s7810_s12 + $0x80] sm:$0xff]  }
 0xa21   : > { %3326 = vmatpush1.bf16.msra.mxu0 %v5142_v57  ;;  %3367 = vmatpush1.bf16.msra.mxu1 %v5144_v61  ;;  %v2302_v57 = vld [vmem:[%s7808_s10 + $0x38] sm:$0xff] }
 0xa22   : > { %3393 = vmatprep.subr.bf16.mxu0 %v5259_v63  ;;  %3434 = vmatprep.subr.bf16.mxu1 %v5261_v39  ;;  %v2310_v61 = vld [vmem:[%s7808_s10 + $0x78] sm:$0xff]  ;;  %v5162_v63 = vcombine.low %v2317_v60, %v2325_v46  ;;  %v5164_v39 = vcombine.low %v2318_v47, %v2326_v48 }
 0xa23   : > { %v5149_v1 = vcombine.high %v2302_v57, %v2310_v61  ;;  %v5148_v59 = vcombine.low %v2302_v57, %v2310_v61 }
 0xa24   : > { %3344 = vmatmul.mubr.bf16.vlgmr.msra.gmra.mxu0 %v7054_v43  ;;  %3385 = vmatmul.mubr.bf16.vlgmr.msra.gmra.mxu1 %v7054_v43 }
 0xa25   : > { %3394 = vmatpush1.bf16.msra.mxu0 %v5258_v2  ;;  %3435 = vmatpush1.bf16.msra.mxu1 %v5260_v15  ;;  %v5969_v2 = vld [vmem:[%s7810_s12 + $0x78] sm:$0xff]  }
 0xa26   : > { %3395 = vmatprep.subr.bf16.mxu0 %v5243_v16  ;;  %3436 = vmatprep.subr.bf16.mxu1 %v5245_v17  ;;  %v5970_v15 = vld [vmem:[%s7810_s12 + $0xf8] sm:$0xff]  }
 0xa27   : > { %3425 = vmatprep.mubr.bf16.mxu0 %v6184_v34  ;;  %3466 = vmatprep.mubr.bf16.mxu1 %v6184_v34  ;;  %v2350_v34 = vld [vmem:[%s7808_s10 + $0x1b8] sm:$0xff] }
 0xa28   : > { %v5197_v37 = vcombine.high %v2350_v34, %v2358_v52  ;;  %v5196_v42 = vcombine.low %v2350_v34, %v2358_v52  ;;  %v5971_v16 = vld [vmem:[%s7810_s12 + $0x38] sm:$0xff]   ;;  %v5992_v34 = vld [vmem:[%s7810_s12 + $0x90] sm:$0xff]   ;;  %v5993_v52 = vld [vmem:[%s7810_s12 + $0x48] sm:$0xff]  }
 0xa29   : > { %3396 = vmatpush1.bf16.msra.mxu0 %v5242_v23  ;;  %3437 = vmatpush1.bf16.msra.mxu1 %v5244_v6  ;;  %v5972_v17 = vld [vmem:[%s7810_s12 + $0xb8] sm:$0xff]   ;;  %v5977_v23 = vld [vmem:[%s7810_s12 + $0x68] sm:$0xff]  }
 0xa2a   : > { %3397 = vmatprep.subr.bf16.mxu0 %v5227_v14  ;;  %3438 = vmatprep.subr.bf16.mxu1 %v5229_v24  ;;  %v5979_v6 = vld [vmem:[%s7810_s12 + $0x28] sm:$0xff]   ;;  %v5981_v24 = vld [vmem:[%s7810_s12 + $0x60] sm:$0xff]  }
 0xa2b   : > { %v5980_v14 = vld [vmem:[%s7810_s12 + $0xa8] sm:$0xff]  }
 0xa2d   : > { %3398 = vmatpush1.bf16.msra.mxu0 %v5226_v28  ;;  %3439 = vmatpush1.bf16.msra.mxu1 %v5228_v29  ;;  %v5986_v28 = vld [vmem:[%s7810_s12 + $0xd8] sm:$0xff]  }
 0xa2e   : > { %3399 = vmatprep.subr.bf16.mxu0 %v5211_v62  ;;  %3440 = vmatprep.subr.bf16.mxu1 %v5213_v9  ;;  %v5987_v29 = vld [vmem:[%s7810_s12 + $0x18] sm:$0xff]   ;;  %v5989_v9 = vld [vmem:[%s7810_s12 + $0x50] sm:$0xff]  }
 0xa2f   : > { %v5988_v62 = vld [vmem:[%s7810_s12 + $0x98] sm:$0xff]  }
 0xa31   : > { %3400 = vmatpush1.bf16.msra.mxu0 %v5210_v31  ;;  %3441 = vmatpush1.bf16.msra.mxu1 %v5212_v35  ;;  %v5994_v31 = vld [vmem:[%s7810_s12 + $0xc8] sm:$0xff]  }
 0xa32   : > { %3401 = vmatprep.subr.bf16.mxu0 %v5195_v36  ;;  %3442 = vmatprep.subr.bf16.mxu1 %v5197_v37  ;;  %v5995_v35 = vld [vmem:[%s7810_s12 + $0x8] sm:$0xff]   ;;  %v5997_v37 = vld [vmem:[%s7810_s12 + $0x40] sm:$0xff]  }
 0xa33   : > { %v5996_v36 = vld [vmem:[%s7810_s12 + $0x88] sm:$0xff]  }
 0xa35   : > { %3402 = vmatpush1.bf16.msra.mxu0 %v5194_v3  ;;  %3443 = vmatpush1.bf16.msra.mxu1 %v5196_v42  ;;  %v6002_v3 = vld [vmem:[%s7810_s12 + $0x1f8] sm:$0xff]   ;;  %v7439_v42 = vld [vmem:[%s7809_s11] sm:$0xff] }
 0xa36   : > { %3403 = vmatprep.subr.bf16.mxu0 %v5179_v44  ;;  %3444 = vmatprep.subr.bf16.mxu1 %v5181_v45  ;;  %v2430_v44 = vrot.slane %v7439_v42, %v6668_v11  ;;  %v2438_v45 = vrot.slane %v7439_v42, %v6693_v32  ;;  %v2434_v60 = vrot.slane %v7439_v42, %v6673_v12 }
 0xa37   : > { %v2442_v46 = vrot.slane %v7439_v42, %v6696_v33 }
 0xa39   : > { %3404 = vmatpush1.bf16.msra.mxu0 %v5178_v49  ;;  %3445 = vmatpush1.bf16.msra.mxu1 %v5180_v50 }
 0xa3a   : > { %3405 = vmatprep.subr.bf16.mxu0 %v5163_v53  ;;  %3446 = vmatprep.subr.bf16.mxu1 %v5165_v54 }
 0xa3d   : > { %3406 = vmatpush1.bf16.msra.mxu0 %v5162_v63  ;;  %3447 = vmatpush1.bf16.msra.mxu1 %v5164_v39 }
 0xa3e   : > { %3407 = vmatprep.subr.bf16.mxu0 %v5147_v5  ;;  %3448 = vmatprep.subr.bf16.mxu1 %v5149_v1 }
 0xa41   : > { %3408 = vmatpush1.bf16.msra.mxu0 %v5146_v13  ;;  %3449 = vmatpush1.bf16.msra.mxu1 %v5148_v59 }
 0xa42   : > { %5447 = vmatprep.subr.bf16.mxu0 %v5969_v2  ;;  %5469 = vmatprep.subr.bf16.mxu1 %v5970_v15 }
 0xa44   : > { %3426 = vmatmul.mubr.bf16.vlgmr.msra.gmra.mxu0 %v7054_v43  ;;  %3467 = vmatmul.mubr.bf16.vlgmr.msra.gmra.mxu1 %v7054_v43  ;;  %v5978_v43 = vld [vmem:[%s7810_s12 + $0xe8] sm:$0xff]  }
 0xa45   : > { %5448 = vmatpush3.bf16.msra.mxu0 %v5971_v16  ;;  %5470 = vmatpush3.bf16.msra.mxu1 %v5972_v17  ;;  %v6003_v16 = vld [vmem:[%s7810_s12 + $0x138] sm:$0xff]  }
 0xa46   : > { %5449 = vmatprep.subr.bf16.mxu0 %v5973_v19  ;;  %5471 = vmatprep.subr.bf16.mxu1 %v5974_v20  ;;  %v6004_v17 = vld [vmem:[%s7810_s12 + $0x1b8] sm:$0xff]  }
 0xa49   : > { %5450 = vmatpush3.bf16.msra.mxu0 %v5975_v21  ;;  %5472 = vmatpush3.bf16.msra.mxu1 %v5976_v22  ;;  %v6005_v21 = vld [vmem:[%s7810_s12 + $0x170] sm:$0xff]  }
 0xa4a   : > { %5451 = vmatprep.subr.bf16.mxu0 %v5977_v23  ;;  %5473 = vmatprep.subr.bf16.mxu1 %v5978_v43  ;;  %v6006_v22 = vld [vmem:[%s7810_s12 + $0x1f0] sm:$0xff]  }
 0xa4b   : > { %v6007_v23 = vld [vmem:[%s7810_s12 + $0x130] sm:$0xff]  }
 0xa4c   : > { %v6008_v43 = vld [vmem:[%s7810_s12 + $0x1b0] sm:$0xff]  }
 0xa4d   : > { %5452 = vmatpush3.bf16.msra.mxu0 %v5979_v6  ;;  %5474 = vmatpush3.bf16.msra.mxu1 %v5980_v14  ;;  %v6009_v6 = vld [vmem:[%s7810_s12 + $0x168] sm:$0xff]  }
 0xa4e   : > { %5453 = vmatprep.subr.bf16.mxu0 %v5981_v24  ;;  %5475 = vmatprep.subr.bf16.mxu1 %v5982_v25  ;;  %v6010_v14 = vld [vmem:[%s7810_s12 + $0x1e8] sm:$0xff]  }
 0xa4f   : > { %v6011_v24 = vld [vmem:[%s7810_s12 + $0x128] sm:$0xff]  }
 0xa50   : > { %v6012_v25 = vld [vmem:[%s7810_s12 + $0x1a8] sm:$0xff]  }
 0xa51   : > { %5454 = vmatpush3.bf16.msra.mxu0 %v5983_v26  ;;  %5476 = vmatpush3.bf16.msra.mxu1 %v5984_v27  ;;  %v6013_v26 = vld [vmem:[%s7810_s12 + $0x160] sm:$0xff]  }
 0xa52   : > { %5455 = vmatprep.subr.bf16.mxu0 %v5985_v18  ;;  %5477 = vmatprep.subr.bf16.mxu1 %v5986_v28  ;;  %v6014_v27 = vld [vmem:[%s7810_s12 + $0x1e0] sm:$0xff]  }
 0xa53   : > { %v6015_v18 = vld [vmem:[%s7810_s12 + $0x120] sm:$0xff]  }
 0xa54   : > { %v6016_v28 = vld [vmem:[%s7810_s12 + $0x1a0] sm:$0xff]  }
 0xa55   : > { %5456 = vmatpush3.bf16.msra.mxu0 %v5987_v29  ;;  %5478 = vmatpush3.bf16.msra.mxu1 %v5988_v62  ;;  %v6017_v29 = vld [vmem:[%s7810_s12 + $0x158] sm:$0xff]  }
 0xa56   : > { %5457 = vmatprep.subr.bf16.mxu0 %v5989_v9  ;;  %5479 = vmatprep.subr.bf16.mxu1 %v5990_v0  ;;  %v6018_v62 = vld [vmem:[%s7810_s12 + $0x1d8] sm:$0xff]  }
 0xa57   : > { %v6019_v9 = vld [vmem:[%s7810_s12 + $0x118] sm:$0xff]  }
 0xa58   : > { %v6020_v0 = vld [vmem:[%s7810_s12 + $0x198] sm:$0xff]  }
 0xa59   : > { %5458 = vmatpush3.bf16.msra.mxu0 %v5991_v30  ;;  %5480 = vmatpush3.bf16.msra.mxu1 %v5992_v34  ;;  %v6021_v30 = vld [vmem:[%s7810_s12 + $0x150] sm:$0xff]  }
 0xa5a   : > { %5459 = vmatprep.subr.bf16.mxu0 %v5993_v52  ;;  %5481 = vmatprep.subr.bf16.mxu1 %v5994_v31  ;;  %v6022_v34 = vld [vmem:[%s7810_s12 + $0x1d0] sm:$0xff]  }
 0xa5b   : > { %v6023_v52 = vld [vmem:[%s7810_s12 + $0x110] sm:$0xff]  }
 0xa5c   : > { %v6024_v31 = vld [vmem:[%s7810_s12 + $0x190] sm:$0xff]  }
 0xa5d   : > { %5460 = vmatpush3.bf16.msra.mxu0 %v5995_v35  ;;  %5482 = vmatpush3.bf16.msra.mxu1 %v5996_v36  ;;  %v6025_v35 = vld [vmem:[%s7810_s12 + $0x148] sm:$0xff]  }
 0xa5e   : > { %5461 = vmatprep.subr.bf16.mxu0 %v5997_v37  ;;  %5483 = vmatprep.subr.bf16.mxu1 %v5998_v38  ;;  %v6026_v36 = vld [vmem:[%s7810_s12 + $0x1c8] sm:$0xff]   ;;  %v2446_v37 = vrot.slane %v7439_v42, %v6655_v7  ;;  %v2454_v38 = vrot.slane %v7439_v42, %v6801_v4 }
 0xa61   : > { %5462 = vmatpush3.bf16.msra.mxu0 %v5999_v40  ;;  %5484 = vmatpush3.bf16.msra.mxu1 %v6000_v58  ;;  %v2450_v40 = vrot.slane %v7439_v42, %v6658_v8  ;;  %v2458_v58 = vrot.slane %v7439_v42, %v6806_v10  ;;  %v6030_v42 = vld [vmem:[%s7810_s12 + $0x1c0] sm:$0xff]  }
 0xa62   : > { %5491 = vmatprep.subr.bf16.mxu0 %v6001_v41  ;;  %5513 = vmatprep.subr.bf16.mxu1 %v6002_v3  ;;  %v6027_v41 = vld [vmem:[%s7810_s12 + $0x108] sm:$0xff]  }
 0xa63   : > { %v6028_v3 = vld [vmem:[%s7810_s12 + $0x188] sm:$0xff]  }
 0xaa4   : > { %v3181_v47 = vpop.f32.mrf.mxu0  ;;  %v3222_v48 = vpop.f32.mrf.mxu1 }
 0xaa5   : > { %v3182_v49 = vadd.f32 %v3181_v47, %v2430_v44  ;;  %v3223_v50 = vadd.f32 %v3222_v48, %v2438_v45 }
 0xaa6   : > { %v3183_v53 = vpop.f32.mrf.mxu0  ;;  %v3224_v54 = vpop.f32.mrf.mxu1 }
 0xaa7   : > { %v3184_v55 = vadd.f32 %v3183_v53, %v2434_v60  ;;  %v3225_v56 = vadd.f32 %v3224_v54, %v2442_v46  ;;  %v3475_v57 = vmax.f32 %v3182_v49, 0.0  ;;  %v3477_v61 = vmax.f32 %v3223_v50, 0.0  ;;  %v6029_v60 = vld [vmem:[%s7810_s12 + $0x140] sm:$0xff]  }
 0xaa8   : > { %v3185_v63 = vpop.f32.mrf.mxu0  ;;  %v3226_v39 = vpop.f32.mrf.mxu1  ;;  %v6031_v54 = vld [vmem:[%s7810_s12 + $0x100] sm:$0xff]  }
 0xaa9   : > { %v3476_v5 = vmax.f32 %v3184_v55, 0.0  ;;  %v3478_v1 = vmax.f32 %v3225_v56, 0.0  ;;  %v3491_v19 = vpack.c.bf16 %v3475_v57, %v3475_v57  ;;  %v3493_v20 = vpack.c.bf16 %v3477_v61, %v3477_v61  ;;  %v6032_v55 = vld [vmem:[%s7810_s12 + $0x180] sm:$0xff]   ;;  %v6033_v39 = vld [vmem:[%s7810_s12 + $0x278] sm:$0xff]  }
 0xaaa   : > { %v3186_v13 = vpop.f32.mrf.mxu0  ;;  %v3227_v59 = vpop.f32.mrf.mxu1 }
 0xaab   : > { %v3492_v2 = vpack.c.bf16 %v3476_v5, %v3476_v5  ;;  %v3494_v15 = vpack.c.bf16 %v3478_v1, %v3478_v1  ;;  %v6034_v5 = vld [vmem:[%s7810_s12 + $0x2f8] sm:$0xff]  }
 0xaad   : > { %4563 = vmatprep.mubr.bf16.mxu0 %v3492_v2  ;;  %4603 = vmatprep.mubr.bf16.mxu1 %v3494_v15 }
 0xaae   : > { %4564 = vmatmul.mubr.bf16.vlgmr.msra.gmra.mxu0 %v3491_v19  ;;  %4604 = vmatmul.mubr.bf16.vlgmr.msra.gmra.mxu1 %v3493_v20  ;;  %v6036_v19 = vld [vmem:[%s7810_s12 + $0x2b8] sm:$0xff]  }
 0xaaf   : > { %5492 = vmatpush3.bf16.msra.mxu0 %v6003_v16  ;;  %5514 = vmatpush3.bf16.msra.mxu1 %v6004_v17  ;;  %v6035_v17 = vld [vmem:[%s7810_s12 + $0x238] sm:$0xff]  }
 0xab0   : > { %5493 = vmatprep.subr.bf16.mxu0 %v6005_v21  ;;  %5515 = vmatprep.subr.bf16.mxu1 %v6006_v22  ;;  %v6037_v22 = vld [vmem:[%s7810_s12 + $0x270] sm:$0xff]  }
 0xab3   : > { %5494 = vmatpush3.bf16.msra.mxu0 %v6007_v23  ;;  %5516 = vmatpush3.bf16.msra.mxu1 %v6008_v43  ;;  %v6038_v23 = vld [vmem:[%s7810_s12 + $0x2f0] sm:$0xff]  }
 0xab4   : > { %5495 = vmatprep.subr.bf16.mxu0 %v6009_v6  ;;  %5517 = vmatprep.subr.bf16.mxu1 %v6010_v14  ;;  %v6039_v43 = vld [vmem:[%s7810_s12 + $0x230] sm:$0xff]   ;;  %v6041_v14 = vld [vmem:[%s7810_s12 + $0x268] sm:$0xff]  }
 0xab5   : > { %v6040_v6 = vld [vmem:[%s7810_s12 + $0x2b0] sm:$0xff]  }
 0xab7   : > { %5496 = vmatpush3.bf16.msra.mxu0 %v6011_v24  ;;  %5518 = vmatpush3.bf16.msra.mxu1 %v6012_v25  ;;  %v6042_v24 = vld [vmem:[%s7810_s12 + $0x2e8] sm:$0xff]  }
 0xab8   : > { %5497 = vmatprep.subr.bf16.mxu0 %v6013_v26  ;;  %5519 = vmatprep.subr.bf16.mxu1 %v6014_v27  ;;  %v6043_v25 = vld [vmem:[%s7810_s12 + $0x228] sm:$0xff]   ;;  %v6045_v27 = vld [vmem:[%s7810_s12 + $0x260] sm:$0xff]  }
 0xab9   : > { %v6044_v26 = vld [vmem:[%s7810_s12 + $0x2a8] sm:$0xff]  }
 0xabb   : > { %5498 = vmatpush3.bf16.msra.mxu0 %v6015_v18  ;;  %5520 = vmatpush3.bf16.msra.mxu1 %v6016_v28  ;;  %v6046_v18 = vld [vmem:[%s7810_s12 + $0x2e0] sm:$0xff]  }
 0xabc   : > { %5499 = vmatprep.subr.bf16.mxu0 %v6017_v29  ;;  %5521 = vmatprep.subr.bf16.mxu1 %v6018_v62  ;;  %v6047_v28 = vld [vmem:[%s7810_s12 + $0x220] sm:$0xff]   ;;  %v6049_v62 = vld [vmem:[%s7810_s12 + $0x258] sm:$0xff]  }
 0xabd   : > { %v6048_v29 = vld [vmem:[%s7810_s12 + $0x2a0] sm:$0xff]  }
 0xabf   : > { %5500 = vmatpush3.bf16.msra.mxu0 %v6019_v9  ;;  %5522 = vmatpush3.bf16.msra.mxu1 %v6020_v0  ;;  %v6050_v9 = vld [vmem:[%s7810_s12 + $0x2d8] sm:$0xff]  }
 0xac0   : > { %5501 = vmatprep.subr.bf16.mxu0 %v6021_v30  ;;  %5523 = vmatprep.subr.bf16.mxu1 %v6022_v34  ;;  %v6051_v0 = vld [vmem:[%s7810_s12 + $0x218] sm:$0xff]   ;;  %v6053_v34 = vld [vmem:[%s7810_s12 + $0x250] sm:$0xff]  }
 0xac1   : > { %v6052_v30 = vld [vmem:[%s7810_s12 + $0x298] sm:$0xff]  }
 0xac3   : > { %5502 = vmatpush3.bf16.msra.mxu0 %v6023_v52  ;;  %5524 = vmatpush3.bf16.msra.mxu1 %v6024_v31  ;;  %v6054_v52 = vld [vmem:[%s7810_s12 + $0x2d0] sm:$0xff]   ;;  %v7616_v31 = vld [vmem:[%s7809_s11 + $0x8] sm:$0xff] }
 0xac4   : > { %v3263_v44 = vpop.f32.mrf.mxu0  ;;  %v3304_v45 = vpop.f32.mrf.mxu1  ;;  %5503 = vmatprep.subr.bf16.mxu0 %v6025_v35  ;;  %5525 = vmatprep.subr.bf16.mxu1 %v6026_v36  ;;  %v6055_v35 = vld [vmem:[%s7810_s12 + $0x210] sm:$0xff]  }
 0xac5   : > { %v3264_v46 = vadd.f32 %v3263_v44, %v2446_v37  ;;  %v3305_v47 = vadd.f32 %v3304_v45, %v2454_v38  ;;  %v6056_v36 = vld [vmem:[%s7810_s12 + $0x290] sm:$0xff]   ;;  %v6057_v37 = vld [vmem:[%s7810_s12 + $0x248] sm:$0xff]  }
 0xac6   : > { %v3265_v48 = vpop.f32.mrf.mxu0  ;;  %v3306_v49 = vpop.f32.mrf.mxu1  ;;  %v6058_v38 = vld [vmem:[%s7810_s12 + $0x2c8] sm:$0xff]  }
 0xac7   : > { %v3266_v50 = vadd.f32 %v3265_v48, %v2450_v40  ;;  %v3307_v53 = vadd.f32 %v3306_v49, %v2458_v58  ;;  %5504 = vmatpush3.bf16.msra.mxu0 %v6027_v41  ;;  %5526 = vmatpush3.bf16.msra.mxu1 %v6028_v3  ;;  %v3479_v56 = vmax.f32 %v3264_v46, 0.0  ;;  %v3481_v57 = vmax.f32 %v3305_v47, 0.0  ;;  %v6059_v44 = vld [vmem:[%s7810_s12 + $0x208] sm:$0xff]  }
 0xac8   : > { %v3267_v61 = vpop.f32.mrf.mxu0  ;;  %v3308_v63 = vpop.f32.mrf.mxu1  ;;  %5505 = vmatprep.subr.bf16.mxu0 %v6029_v60  ;;  %5527 = vmatprep.subr.bf16.mxu1 %v6030_v42  ;;  %v2462_v40 = vrot.slane %v7616_v31, %v6668_v11  ;;  %v2470_v58 = vrot.slane %v7616_v31, %v6693_v32  ;;  %v2466_v41 = vrot.slane %v7616_v31, %v6673_v12  ;;  %v6060_v45 = vld [vmem:[%s7810_s12 + $0x288] sm:$0xff]   ;;  %v6061_v32 = vld [vmem:[%s7810_s12 + $0x240] sm:$0xff]  }
 0xac9   : > { %v3480_v1 = vmax.f32 %v3266_v50, 0.0  ;;  %v3482_v13 = vmax.f32 %v3307_v53, 0.0  ;;  %v3495_v20 = vpack.c.bf16 %v3479_v56, %v3479_v56  ;;  %v3497_v21 = vpack.c.bf16 %v3481_v57, %v3481_v57  ;;  %v6062_v12 = vld [vmem:[%s7810_s12 + $0x2c0] sm:$0xff]   ;;  %v6065_v61 = vld [vmem:[%s7810_s12 + $0x378] sm:$0xff]  }
 0xaca   : > { %v3268_v59 = vpop.f32.mrf.mxu0  ;;  %v3309_v2 = vpop.f32.mrf.mxu1  ;;  %v2474_v3 = vrot.slane %v7616_v31, %v6696_v33  ;;  %v6063_v50 = vld [vmem:[%s7810_s12 + $0x200] sm:$0xff]   ;;  %v6066_v63 = vld [vmem:[%s7810_s12 + $0x3f8] sm:$0xff]  }
 0xacb   : > { %v3496_v15 = vpack.c.bf16 %v3480_v1, %v3480_v1  ;;  %v3498_v16 = vpack.c.bf16 %v3482_v13, %v3482_v13  ;;  %5506 = vmatpush3.bf16.msra.mxu0 %v6031_v54  ;;  %5528 = vmatpush3.bf16.msra.mxu1 %v6032_v55  ;;  %v6064_v53 = vld [vmem:[%s7810_s12 + $0x280] sm:$0xff]  }
 0xacc   : > { %5535 = vmatprep.subr.bf16.mxu0 %v6033_v39  ;;  %5557 = vmatprep.subr.bf16.mxu1 %v6034_v5 }
 0xacd   : > { %4643 = vmatprep.mubr.bf16.mxu0 %v3496_v15  ;;  %4683 = vmatprep.mubr.bf16.mxu1 %v3498_v16  ;;  %v6067_v15 = vld [vmem:[%s7810_s12 + $0x338] sm:$0xff]  }
 0xace   : > { %4644 = vmatmul.mubr.bf16.vlgmr.msra.gmra.mxu0 %v3495_v20  ;;  %4684 = vmatmul.mubr.bf16.vlgmr.msra.gmra.mxu1 %v3497_v21  ;;  %v6068_v16 = vld [vmem:[%s7810_s12 + $0x3b8] sm:$0xff]   ;;  %v6069_v20 = vld [vmem:[%s7810_s12 + $0x370] sm:$0xff]  }
 0xacf   : > { %5536 = vmatpush3.bf16.msra.mxu0 %v6035_v17  ;;  %5558 = vmatpush3.bf16.msra.mxu1 %v6036_v19  ;;  %v6070_v21 = vld [vmem:[%s7810_s12 + $0x3f0] sm:$0xff]  }
 0xad0   : > { %5537 = vmatprep.subr.bf16.mxu0 %v6037_v22  ;;  %5559 = vmatprep.subr.bf16.mxu1 %v6038_v23  ;;  %v6071_v22 = vld [vmem:[%s7810_s12 + $0x330] sm:$0xff]  }
 0xad1   : > { %v6072_v23 = vld [vmem:[%s7810_s12 + $0x3b0] sm:$0xff]  }
 0xad3   : > { %5538 = vmatpush3.bf16.msra.mxu0 %v6039_v43  ;;  %5560 = vmatpush3.bf16.msra.mxu1 %v6040_v6  ;;  %v6073_v43 = vld [vmem:[%s7810_s12 + $0x368] sm:$0xff]  }
 0xad4   : > { %5539 = vmatprep.subr.bf16.mxu0 %v6041_v14  ;;  %5561 = vmatprep.subr.bf16.mxu1 %v6042_v24  ;;  %v6074_v6 = vld [vmem:[%s7810_s12 + $0x3e8] sm:$0xff]  }
 0xad5   : > { %v6075_v14 = vld [vmem:[%s7810_s12 + $0x328] sm:$0xff]  }
 0xad6   : > { %v6076_v24 = vld [vmem:[%s7810_s12 + $0x3a8] sm:$0xff]  }
 0xad7   : > { %5540 = vmatpush3.bf16.msra.mxu0 %v6043_v25  ;;  %5562 = vmatpush3.bf16.msra.mxu1 %v6044_v26  ;;  %v6077_v25 = vld [vmem:[%s7810_s12 + $0x360] sm:$0xff]  }
 0xad8   : > { %5541 = vmatprep.subr.bf16.mxu0 %v6045_v27  ;;  %5563 = vmatprep.subr.bf16.mxu1 %v6046_v18  ;;  %v6078_v26 = vld [vmem:[%s7810_s12 + $0x3e0] sm:$0xff]  }
 0xad9   : > { %v6079_v27 = vld [vmem:[%s7810_s12 + $0x320] sm:$0xff]  }
 0xada   : > { %v6080_v18 = vld [vmem:[%s7810_s12 + $0x3a0] sm:$0xff]  }
 0xadb   : > { %5542 = vmatpush3.bf16.msra.mxu0 %v6047_v28  ;;  %5564 = vmatpush3.bf16.msra.mxu1 %v6048_v29  ;;  %v6081_v28 = vld [vmem:[%s7810_s12 + $0x358] sm:$0xff]  }
 0xadc   : > { %5543 = vmatprep.subr.bf16.mxu0 %v6049_v62  ;;  %5565 = vmatprep.subr.bf16.mxu1 %v6050_v9  ;;  %v6082_v29 = vld [vmem:[%s7810_s12 + $0x3d8] sm:$0xff]  }
 0xadd   : > { %v6083_v62 = vld [vmem:[%s7810_s12 + $0x318] sm:$0xff]  }
 0xade   : > { %v6084_v9 = vld [vmem:[%s7810_s12 + $0x398] sm:$0xff]  }
 0xadf   : > { %5544 = vmatpush3.bf16.msra.mxu0 %v6051_v0  ;;  %5566 = vmatpush3.bf16.msra.mxu1 %v6052_v30  ;;  %v6085_v0 = vld [vmem:[%s7810_s12 + $0x350] sm:$0xff]  }
 0xae0   : > { %5545 = vmatprep.subr.bf16.mxu0 %v6053_v34  ;;  %5567 = vmatprep.subr.bf16.mxu1 %v6054_v52  ;;  %v6086_v30 = vld [vmem:[%s7810_s12 + $0x3d0] sm:$0xff]  }
 0xae1   : > { %v6087_v34 = vld [vmem:[%s7810_s12 + $0x310] sm:$0xff]  }
 0xae2   : > { %v6088_v52 = vld [vmem:[%s7810_s12 + $0x390] sm:$0xff]  }
 0xae3   : > { %5546 = vmatpush3.bf16.msra.mxu0 %v6055_v35  ;;  %5568 = vmatpush3.bf16.msra.mxu1 %v6056_v36  ;;  %v6089_v35 = vld [vmem:[%s7810_s12 + $0x348] sm:$0xff]  }
 0xae4   : > { %v3345_v11 = vpop.f32.mrf.mxu0  ;;  %v3386_v60 = vpop.f32.mrf.mxu1  ;;  %5547 = vmatprep.subr.bf16.mxu0 %v6057_v37  ;;  %5569 = vmatprep.subr.bf16.mxu1 %v6058_v38  ;;  %v6090_v36 = vld [vmem:[%s7810_s12 + $0x3c8] sm:$0xff]   ;;  %v2478_v37 = vrot.slane %v7616_v31, %v6655_v7  ;;  %v2486_v38 = vrot.slane %v7616_v31, %v6801_v4  ;;  %v6093_v4 = vld [vmem:[%s7810_s12 + $0x340] sm:$0xff]  }
 0xae5   : > { %v3346_v33 = vadd.f32 %v3345_v11, %v2462_v40  ;;  %v3387_v42 = vadd.f32 %v3386_v60, %v2470_v58  ;;  %v2482_v40 = vrot.slane %v7616_v31, %v6658_v8  ;;  %v2490_v58 = vrot.slane %v7616_v31, %v6806_v10  ;;  %v6094_v8 = vld [vmem:[%s7810_s12 + $0x3c0] sm:$0xff]  }
 0xae6   : > { %v3347_v46 = vpop.f32.mrf.mxu0  ;;  %v3388_v47 = vpop.f32.mrf.mxu1 }
 0xae7   : > { %v3348_v48 = vadd.f32 %v3347_v46, %v2466_v41  ;;  %v3389_v49 = vadd.f32 %v3388_v47, %v2474_v3  ;;  %5548 = vmatpush3.bf16.msra.mxu0 %v6059_v44  ;;  %5570 = vmatpush3.bf16.msra.mxu1 %v6060_v45  ;;  %v3483_v54 = vmax.f32 %v3346_v33, 0.0  ;;  %v3485_v55 = vmax.f32 %v3387_v42, 0.0  ;;  %v6091_v41 = vld [vmem:[%s7810_s12 + $0x308] sm:$0xff]   ;;  %v6096_v33 = vld [vmem:[%s7810_s12 + $0x380] sm:$0xff]  }
 0xae8   : > { %v3349_v56 = vpop.f32.mrf.mxu0  ;;  %v3390_v57 = vpop.f32.mrf.mxu1  ;;  %5549 = vmatprep.subr.bf16.mxu0 %v6061_v32  ;;  %5571 = vmatprep.subr.bf16.mxu1 %v6062_v12  ;;  %v6092_v3 = vld [vmem:[%s7810_s12 + $0x388] sm:$0xff]   ;;  %v6095_v12 = vld [vmem:[%s7810_s12 + $0x300] sm:$0xff]  }
 0xae9   : > { %v3484_v39 = vmax.f32 %v3348_v48, 0.0  ;;  %v3486_v5 = vmax.f32 %v3389_v49, 0.0  ;;  %v3499_v17 = vpack.c.bf16 %v3483_v54, %v3483_v54  ;;  %v3501_v19 = vpack.c.bf16 %v3485_v55, %v3485_v55 }
 0xaea   : > { %v3350_v1 = vpop.f32.mrf.mxu0  ;;  %v3391_v13 = vpop.f32.mrf.mxu1 }
 0xaeb   : > { %v3500_v59 = vpack.c.bf16 %v3484_v39, %v3484_v39  ;;  %v3502_v2 = vpack.c.bf16 %v3486_v5, %v3486_v5  ;;  %5550 = vmatpush3.bf16.msra.mxu0 %v6063_v50  ;;  %5572 = vmatpush3.bf16.msra.mxu1 %v6064_v53 }
 0xaec   : > { %5579 = vmatprep.subr.bf16.mxu0 %v6065_v61  ;;  %5601 = vmatprep.subr.bf16.mxu1 %v6066_v63 }
 0xaed   : > { %4723 = vmatprep.mubr.bf16.mxu0 %v3500_v59  ;;  %4763 = vmatprep.mubr.bf16.mxu1 %v3502_v2 }
 0xaee   : > { %4724 = vmatmul.mubr.bf16.vlgmr.msra.gmra.mxu0 %v3499_v17  ;;  %4764 = vmatmul.mubr.bf16.vlgmr.msra.gmra.mxu1 %v3501_v19 }
 0xaef   : > { %5580 = vmatpush3.bf16.msra.mxu0 %v6067_v15  ;;  %5602 = vmatpush3.bf16.msra.mxu1 %v6068_v16 }
 0xaf0   : > { %5581 = vmatprep.subr.bf16.mxu0 %v6069_v20  ;;  %5603 = vmatprep.subr.bf16.mxu1 %v6070_v21 }
 0xaf3   : > { %5582 = vmatpush3.bf16.msra.mxu0 %v6071_v22  ;;  %5604 = vmatpush3.bf16.msra.mxu1 %v6072_v23 }
 0xaf4   : > { %5583 = vmatprep.subr.bf16.mxu0 %v6073_v43  ;;  %5605 = vmatprep.subr.bf16.mxu1 %v6074_v6 }
 0xaf7   : > { %5584 = vmatpush3.bf16.msra.mxu0 %v6075_v14  ;;  %5606 = vmatpush3.bf16.msra.mxu1 %v6076_v24 }
 0xaf8   : > { %5585 = vmatprep.subr.bf16.mxu0 %v6077_v25  ;;  %5607 = vmatprep.subr.bf16.mxu1 %v6078_v26 }
 0xafb   : > { %5586 = vmatpush3.bf16.msra.mxu0 %v6079_v27  ;;  %5608 = vmatpush3.bf16.msra.mxu1 %v6080_v18 }
 0xafc   : > { %5587 = vmatprep.subr.bf16.mxu0 %v6081_v28  ;;  %5609 = vmatprep.subr.bf16.mxu1 %v6082_v29 }
 0xaff   : > { %5588 = vmatpush3.bf16.msra.mxu0 %v6083_v62  ;;  %5610 = vmatpush3.bf16.msra.mxu1 %v6084_v9 }
 0xb00   : > { %5589 = vmatprep.subr.bf16.mxu0 %v6085_v0  ;;  %5611 = vmatprep.subr.bf16.mxu1 %v6086_v30 }
 0xb03   : > { %5590 = vmatpush3.bf16.msra.mxu0 %v6087_v34  ;;  %5612 = vmatpush3.bf16.msra.mxu1 %v6088_v52 }
 0xb04   : > { %v3427_v7 = vpop.f32.mrf.mxu0  ;;  %v3468_v44 = vpop.f32.mrf.mxu1  ;;  %5591 = vmatprep.subr.bf16.mxu0 %v6089_v35  ;;  %5613 = vmatprep.subr.bf16.mxu1 %v6090_v36 }
 0xb05   : > { %v3428_v10 = vadd.f32 %v3427_v7, %v2478_v37  ;;  %v3469_v31 = vadd.f32 %v3468_v44, %v2486_v38 }
 0xb06   : > { %v3429_v45 = vpop.f32.mrf.mxu0  ;;  %v3470_v11 = vpop.f32.mrf.mxu1 }
 0xb07   : > { %v3430_v60 = vadd.f32 %v3429_v45, %v2482_v40  ;;  %v3471_v32 = vadd.f32 %v3470_v11, %v2490_v58  ;;  %5592 = vmatpush3.bf16.msra.mxu0 %v6091_v41  ;;  %5614 = vmatpush3.bf16.msra.mxu1 %v6092_v3  ;;  %v3487_v42 = vmax.f32 %v3428_v10, 0.0  ;;  %v3489_v46 = vmax.f32 %v3469_v31, 0.0 }
 0xb08   : > { %v3431_v47 = vpop.f32.mrf.mxu0  ;;  %v3472_v48 = vpop.f32.mrf.mxu1  ;;  %5593 = vmatprep.subr.bf16.mxu0 %v6093_v4  ;;  %5615 = vmatprep.subr.bf16.mxu1 %v6094_v8 }
 0xb09   : > { %v3488_v49 = vmax.f32 %v3430_v60, 0.0  ;;  %v3490_v50 = vmax.f32 %v3471_v32, 0.0  ;;  %v3503_v57 = vpack.c.bf16 %v3487_v42, %v3487_v42  ;;  %v3505_v61 = vpack.c.bf16 %v3489_v46, %v3489_v46  ;;  %v5390_v60 = vld [vmem:[%s7811_s13] ss:$0 sm:$0xff] }
 0xb0a   : > { %v3432_v53 = vpop.f32.mrf.mxu0  ;;  %v3473_v54 = vpop.f32.mrf.mxu1 }
 0xb0b   : > { %v3504_v55 = vpack.c.bf16 %v3488_v49, %v3488_v49  ;;  %v3506_v56 = vpack.c.bf16 %v3490_v50, %v3490_v50  ;;  %5594 = vmatpush3.bf16.msra.mxu0 %v6095_v12  ;;  %5616 = vmatpush3.bf16.msra.mxu1 %v6096_v33 }
 0xb0d   : > { %4803 = vmatprep.mubr.bf16.mxu0 %v3504_v55  ;;  %4843 = vmatprep.mubr.bf16.mxu1 %v3506_v56 }
 0xb0e   : > { %4804 = vmatmul.mubr.bf16.vlgmr.msra.gmra.mxu0 %v3503_v57  ;;  %4844 = vmatmul.mubr.bf16.vlgmr.msra.gmra.mxu1 %v3505_v61 }
 0xb6e   : > { %v5463_v63 = vpop.f32.mrf.mxu0  ;;  %v5485_v39 = vpop.f32.mrf.mxu1 }
 0xb70   : > { %v5464_v5 = vpop.f32.mrf.mxu0  ;;  %v5486_v1 = vpop.f32.mrf.mxu1 }
 0xb71   : > { %v5465_v13 = vadd.f32 %v5464_v5, %v5463_v63  ;;  %v5487_v59 = vadd.f32 %v5486_v1, %v5485_v39 }
 0xb72   : > { %v5466_v2 = vpop.f32.mrf.mxu0  ;;  %v5488_v15 = vpop.f32.mrf.mxu1 }
 0xb73   : > { %v4606_v16 = vadd.f32 %v5487_v59, %v5465_v13 }
 0xb74   : > { %v5467_v17 = vpop.f32.mrf.mxu0  ;;  %v5489_v19 = vpop.f32.mrf.mxu1 }
 0xb8e   : > { %v5507_v20 = vpop.f32.mrf.mxu0  ;;  %v5529_v21 = vpop.f32.mrf.mxu1 }
 0xb90   : > { %v5508_v22 = vpop.f32.mrf.mxu0  ;;  %v5530_v23 = vpop.f32.mrf.mxu1 }
 0xb91   : > { %v5509_v0 = vadd.f32 %v5508_v22, %v5507_v20  ;;  %v5531_v34 = vadd.f32 %v5530_v23, %v5529_v21 }
 0xb92   : > { %v5510_v43 = vpop.f32.mrf.mxu0  ;;  %v5532_v6 = vpop.f32.mrf.mxu1 }
 0xb93   : > { %v4646_v30 = vadd.f32 %v5509_v0, %v4606_v16 }
 0xb94   : > { %v5511_v14 = vpop.f32.mrf.mxu0  ;;  %v5533_v24 = vpop.f32.mrf.mxu1 }
 0xb95   : > { %v4686_v35 = vadd.f32 %v5531_v34, %v4646_v30 }
 0xbae   : > { %v5551_v25 = vpop.f32.mrf.mxu0  ;;  %v5573_v26 = vpop.f32.mrf.mxu1 }
 0xbb0   : > { %v5552_v27 = vpop.f32.mrf.mxu0  ;;  %v5574_v18 = vpop.f32.mrf.mxu1 }
 0xbb1   : > { %v5553_v52 = vadd.f32 %v5552_v27, %v5551_v25  ;;  %v5575_v40 = vadd.f32 %v5574_v18, %v5573_v26 }
 0xbb2   : > { %v5554_v28 = vpop.f32.mrf.mxu0  ;;  %v5576_v29 = vpop.f32.mrf.mxu1 }
 0xbb3   : > { %v4726_v36 = vadd.f32 %v5553_v52, %v4686_v35 }
 0xbb4   : > { %v5555_v62 = vpop.f32.mrf.mxu0  ;;  %v5577_v9 = vpop.f32.mrf.mxu1 }
 0xbb5   : > { %v4766_v3 = vadd.f32 %v5575_v40, %v4726_v36 }
 0xbce   : > { %v5595_v37 = vpop.f32.mrf.mxu0  ;;  %v5617_v38 = vpop.f32.mrf.mxu1 }
 0xbd0   : > { %v5596_v58 = vpop.f32.mrf.mxu0  ;;  %v5618_v41 = vpop.f32.mrf.mxu1 }
 0xbd1   : > { %v5597_v7 = vadd.f32 %v5596_v58, %v5595_v37  ;;  %v5619_v10 = vadd.f32 %v5618_v41, %v5617_v38 }
 0xbd2   : > { %v5598_v44 = vpop.f32.mrf.mxu0  ;;  %v5620_v4 = vpop.f32.mrf.mxu1 }
 0xbd3   : > { %v4806_v8 = vadd.f32 %v5597_v7, %v4766_v3 }
 0xbd4   : > { %v5599_v31 = vpop.f32.mrf.mxu0  ;;  %v5621_v45 = vpop.f32.mrf.mxu1 }
 0xbd5   : > { %v4846_v11 = vadd.f32 %v5619_v10, %v4806_v8 }
 0xbd7   : > { %v4851_v32 = vadd.f32 %v4846_v11, %v6917_v51 }
 0xbd9   : > { %v4859_v12 = vadd.f32 %v5390_v60, %v4851_v32 }
 0xbdb   : > { %4860 = vst [vmem:[%s469_s22] sm:$0xff] %v4859_v12 }
 0xbdc   : > { %6135 = shalt.err (!%p6132_p3)
}
 0xbdd   : > { %s6136_s27 = scalar_lea.hbm %s4873_s21, 128  ;;  %s6140_s22 = scalar_lea.hbm %s7812_s14, 256 }
 0xbde   : > { %p6137_p4 = scmp.ne.s32.totalorder %s4873_s21, %s6136_s27  ;;  %p6141_p9 = scmp.lt.s32.totalorder %s4873_s21, %s7812_s14 }
 0xbdf   : > { %p6142_p10 = scmp.lt.s32.totalorder %s6140_s22, %s6136_s27 }
 0xbe0   : > { %p6138_p7 = pnand %p6137_p4, %p6301_p5 }
 0xbe1   : > { %p6143_p11 = por %p6142_p10, %p6141_p9 }
 0xbe2   : > { %p6139_p8 = pneg %p6138_p7 }
 0xbe4   : > { %p6144_p12 = pnand %p6143_p11, %p6139_p8 }
 0xbe6   : > { %6147 = shalt.err (!%p6144_p12)
}
 0xbe7   : > { %5751 = dma.vmem_to_hbm [thread:$0]  (%p6301_p5), %s4876_s19, 128, %s4873_s21, %s4862_s26  }
 0xbe8 PF: > { %p5757_p13 = scmp.ge.s32.totalorder %s6182_s16, 2  ;;  %s4887_s0 = sand.u32 1, %s6170_s29  }
 0xbe9   : > { %s4888_s28 = scalar_lea.sflag [#allocation3], %s4887_s0 }
 0xbea   : > { %p5754_p0 = pnand %p5757_p13, %p6305_p6 }
 0xbec   : > { %p5755_p1 = pneg %p5754_p0 }
 0xbee   : > { %6165 = dma.done.wait (%p5755_p1), %s4888_s28, 128  }
 0xbef   : > { %6167 = vsyncadd (%p5755_p1), %s4888_s28, 4294967168  ;;  %s7828_s16 = sld [smem:[#allocation6_spill]]  ;;  %s7831_s29 = smov %s6174_s30 }
 0xbf0   : > { %s7829_s17 = sld [smem:[#allocation5_spill]] }
 0xbf1   : > { %s7830_s15 = sld [smem:[#allocation7_spill]] }
 0xbf5   : > { %p24_p2 = scmp.ge.s32.totalorder %s7828_s16, 4  }
 0xbf6   : > { %s7832_s30 = smov %s7829_s17 }
 0xbf7   :  { %26 = sbr.rel (!%p24_p2) target bundleno = 5 (0x5), region = 117 }
 0xbfc   :  { %4893 = vsyncpa [#allocation3], 1 }
 0xbfd   :  { %4895 = vsyncpa [#allocation3 + $0x1], 1 }

</bundles_post_ra>
